<compile_context>
chip_gen: v5e
topology: v5e:2x2
jax: 0.10.0
libtpu: 0.0.40
codegen_flags: <defaults>
</compile_context>

<pallas_src>
import functools

import jax
import jax.numpy as jnp
from jax import lax
from jax.experimental import pallas as pl
from jax.experimental.pallas import tpu as pltpu


# ----------------------------------------------------------------------------
# Single fused kernel: one grid step per batch element.
# ----------------------------------------------------------------------------
def _fused_kernel(
    vid_ref, txt_ref,
    # video projection (2 stacked LinearLayers)
    v_ln0, v_w0, v_b0, v_ln1, v_w1, v_b1,
    # global-token (txt) projection
    t_ln0, t_w0, t_b0, t_ln1, t_w1, t_b1,
    # word projection
    u_ln0, u_w0, u_b0, u_ln1, u_w1, u_b1,
    # token-type embeddings (2, H)
    tok_ref,
    # ConfidenceScorer: conv taps + MLP
    wc_ref, bc_ref, m1_ref, mb1_ref, m2_ref, mb2_ref, m3_ref, mb3_ref,
    # outputs
    vid_out, txt_out, sim_out, cls_out,
    *, conv_k,
):
    f32 = jnp.float32
    bf16 = jnp.bfloat16

    def ln_linear(x, ln, w_ref, b, relu):
        # LayerNorm(eps=1e-5) -> Dropout(eval: identity) -> Linear -> optional ReLU
        x = x.astype(f32)                               # LN stats in f32 (v5e has no bf16 VPU)
        mu = jnp.mean(x, axis=-1, keepdims=True)
        var = jnp.mean((x - mu) ** 2, axis=-1, keepdims=True)
        xn = (x - mu) * lax.rsqrt(var + 1e-5)
        xn = xn * ln[0:1, :] + ln[1:2, :]
        y = jnp.dot(xn.astype(bf16), w_ref[...],        # bf16 MXU, f32 accumulate
                    preferred_element_type=f32) + b[0:1, :]
        return jnp.maximum(y, 0.0) if relu else y

    vid = vid_ref[0]                                    # (T, Dv)
    txt = txt_ref[0]                                    # (L, Dt)
    T = vid.shape[0]
    L = txt.shape[0]
    H = v_w1.shape[1]

    # ---- input projections (n_input_proj=2 -> relu flags [True, False]), chained in VMEM ----
    v = ln_linear(vid, v_ln0[...], v_w0, v_b0[...], relu=True)
    v = ln_linear(v,   v_ln1[...], v_w1, v_b1[...], relu=False)

    # glob / word projections share the text input: run both weight stacks over all L rows
    # (per-row ops, so row 0 of the glob path == projecting just the glob token), then select.
    g_all = ln_linear(txt,   t_ln0[...], t_w0, t_b0[...], relu=True)
    g_all = ln_linear(g_all, t_ln1[...], t_w1, t_b1[...], relu=False)
    w_all = ln_linear(txt,   u_ln0[...], u_w0, u_b0[...], relu=True)
    w_all = ln_linear(w_all, u_ln1[...], u_w1, u_b1[...], relu=False)

    row = lax.broadcasted_iota(jnp.int32, (L, 1), 0)
    txt_emb = jnp.where(row == 0, g_all, w_all)         # cat([glob, word], dim=1)
    q = g_all[0:1, :]                                   # projected global token (pre token-type)

    # ---- token-type embeddings: video tokens idx 1, text tokens idx 0 ----
    vid_emb = v + tok_ref[1:2, :]
    txt_emb = txt_emb + tok_ref[0:1, :]
    vid_out[0] = vid_emb
    txt_out[0] = txt_emb

    # ---- cosine similarity along channels (torch eps semantics), lane-dense (1, T) ----
    cn = (((1,), (1,)), ((), ()))                        # contract last dim of both operands
    qv = lax.dot_general(q, vid_emb, cn, preferred_element_type=f32)                 # (1, T)
    vv = lax.dot_general(jnp.ones((1, H), f32), vid_emb * vid_emb, cn,
                         preferred_element_type=f32)                                 # (1, T)
    qq = jnp.sum(q * q, axis=-1, keepdims=True)                                      # (1, 1)
    denom = jnp.maximum(jnp.sqrt(vv), 1e-8) * jnp.maximum(jnp.sqrt(qq), 1e-8)
    sim_out[0] = qv * pl.reciprocal(denom, approx=True)

    # ---- ConfidenceScorer: Conv2d(C,C,(1,K),pad=K//2) + ReLU, then MLP(C->C/2->C/2->1) ----
    pad = conv_k // 2
    t_idx = lax.broadcasted_iota(jnp.int32, (T, 1), 0)
    acc = jnp.zeros((T, wc_ref.shape[2]), f32)
    for dt in range(conv_k):                             # static unroll over taps
        d = dt - pad
        if d == 0:
            xs = vid_emb
        else:
            # zero-padded time shift via circular roll + edge mask (no sublane-shifted slices)
            rolled = pltpu.roll(vid_emb, shift=(-d) % T, axis=0)
            valid = jnp.logical_and(t_idx + d >= 0, t_idx + d < T)
            xs = jnp.where(valid, rolled, 0.0)
        acc = acc + jnp.dot(xs.astype(bf16), wc_ref[dt], preferred_element_type=f32)
    acc = jnp.maximum(acc + bc_ref[0:1, :], 0.0)         # conv + ReLU

    h = jnp.maximum(jnp.dot(acc.astype(bf16), m1_ref[...],
                            preferred_element_type=f32) + mb1_ref[0:1, :], 0.0)
    h = jnp.maximum(jnp.dot(h.astype(bf16), m2_ref[...],
                            preferred_element_type=f32) + mb2_ref[0:1, :], 0.0)
    # final Ch -> 1 projection, lane-dense: (1,Ch)·(T,Ch)^T -> (1,T)  (no N=1 MXU output)
    cls = lax.dot_general(m3_ref[...], h, cn, preferred_element_type=f32) + mb3_ref[0:1, :]
    cls_out[0] = cls


def _const_spec(arr):
    nd = arr.ndim
    return pl.BlockSpec(arr.shape, lambda b, _nd=nd: (0,) * _nd)


def flashvtg_fused(src_vid, src_txt, params):
    B, T, Dv = src_vid.shape
    _, L, Dt = src_txt.shape
    p = params
    H = p["token_type"].shape[1]
    K = p["kernel_size"]
    ch = p["class_head"]

    weights = [
        p["input_vid_proj"][0]["ln"], p["input_vid_proj"][0]["w"], p["input_vid_proj"][0]["b"],
        p["input_vid_proj"][1]["ln"], p["input_vid_proj"][1]["w"], p["input_vid_proj"][1]["b"],
        p["input_txt_proj"][0]["ln"], p["input_txt_proj"][0]["w"], p["input_txt_proj"][0]["b"],
        p["input_txt_proj"][1]["ln"], p["input_txt_proj"][1]["w"], p["input_txt_proj"][1]["b"],
        p["input_word_proj"][0]["ln"], p["input_word_proj"][0]["w"], p["input_word_proj"][0]["b"],
        p["input_word_proj"][1]["ln"], p["input_word_proj"][1]["w"], p["input_word_proj"][1]["b"],
        p["token_type"],
        ch["wc"], ch["bc"], ch["w1"], ch["b1"], ch["w2"], ch["b2"], ch["w3"], ch["b3"],
    ]

    in_specs = [
        pl.BlockSpec((1, T, Dv), lambda b: (b, 0, 0)),
        pl.BlockSpec((1, L, Dt), lambda b: (b, 0, 0)),
    ] + [_const_spec(w) for w in weights]

    out_shape = (
        jax.ShapeDtypeStruct((B, T, H), jnp.float32),    # vid_emb
        jax.ShapeDtypeStruct((B, L, H), jnp.float32),    # projected text (+ token type)
        jax.ShapeDtypeStruct((B, 1, T), jnp.float32),    # sim_score (lane-dense)
        jax.ShapeDtypeStruct((B, 1, T), jnp.float32),    # class scores (lane-dense)
    )
    out_specs = (
        pl.BlockSpec((1, T, H), lambda b: (b, 0, 0)),
        pl.BlockSpec((1, L, H), lambda b: (b, 0, 0)),
        pl.BlockSpec((1, 1, T), lambda b: (b, 0, 0)),
        pl.BlockSpec((1, 1, T), lambda b: (b, 0, 0)),
    )

    kernel = functools.partial(_fused_kernel, conv_k=K)
    return pl.pallas_call(
        kernel,
        out_shape=out_shape,
        grid=(B,),
        in_specs=in_specs,
        out_specs=out_specs,
        compiler_params=pltpu.CompilerParams(
            dimension_semantics=("parallel",)),          # shard batch across TCs on v7x
    )(src_vid, src_txt, *weights)


# ----------------------------------------------------------------------------
# Parameter construction (deterministic, synthetic) + forward glue
# ----------------------------------------------------------------------------
def _init_linear_layer(key, din, dout):
    return dict(
        ln=jnp.concatenate([jnp.ones((1, din), jnp.float32),       # [gamma; beta]
                            jnp.zeros((1, din), jnp.float32)], axis=0),
        w=(jax.random.normal(key, (din, dout), jnp.float32) * 0.02).astype(jnp.bfloat16),
        b=jnp.zeros((1, dout), jnp.float32),
    )


def build_params(key, txt_dim, vid_dim, hidden, n_input_proj, K, n_strides=4):
    keys = list(jax.random.split(key, 32))
    ki = iter(keys)

    def proj(din):
        dims = [din] + [hidden] * n_input_proj
        return [_init_linear_layer(next(ki), dims[i], dims[i + 1])
                for i in range(n_input_proj)]

    return dict(
        input_vid_proj=proj(vid_dim),
        input_txt_proj=proj(txt_dim),
        input_word_proj=proj(txt_dim),
        token_type=jax.random.normal(next(ki), (2, hidden), jnp.float32) * 0.02,
        kernel_size=K,
        # NOTE: class_head hardcodes 256 channels in the original; here it tracks hidden_dim.
        class_head=dict(
            wc=(jax.random.normal(next(ki), (K, hidden, hidden), jnp.float32) * 0.02
                ).astype(jnp.bfloat16),
            bc=jnp.zeros((1, hidden), jnp.float32),
            w1=(jax.random.normal(next(ki), (hidden, hidden // 2), jnp.float32) * 0.02
                ).astype(jnp.bfloat16),
            b1=jnp.zeros((1, hidden // 2), jnp.float32),
            w2=(jax.random.normal(next(ki), (hidden // 2, hidden // 2), jnp.float32) * 0.02
                ).astype(jnp.bfloat16),
            b2=jnp.zeros((1, hidden // 2), jnp.float32),
            w3=jax.random.normal(next(ki), (1, hidden // 2), jnp.float32) * 0.02,  # row vector
            b3=jnp.zeros((1, 1), jnp.float32),
        ),
        coef=jnp.ones((n_strides,), jnp.float32),
    )


def flashvtg_forward(params, src_txt, src_txt_mask, src_vid, src_vid_mask):
    # TODO(synk): PositionEmbeddingSine / txt_position_embed, Phrase_Generate, Phrase_Context,
    #             txtproj_encoder + main transformer, T_SA, Saliency_proj, pyramid/pooling
    #             adapters, PointGenerator and coord_head are external modules not defined in
    #             the reference; the projected video stream stands in as `vid_emb` / single
    #             pyramid level.
    B, T, _ = src_vid.shape
    vid_emb, src_txt_p, sim, cls = flashvtg_fused(src_vid, src_txt, params)
    return dict(
        vid_emb=vid_emb,
        src_txt=src_txt_p,
        sim_score=sim.reshape(B, T),
        out_class=cls.reshape(B, T, 1),
        out_coord=None,          # TODO(synk): coord_head (build_adapter) not provided
        saliency_scores=None,    # TODO(synk): Saliency_proj not provided
        t2vattnvalues=None,      # TODO(synk): transformer attn weights not provided
    )


if __name__ == "__main__":
    key = jax.random.PRNGKey(0)
    B, T, Lt = 2, 16, 8
    txt_dim, vid_dim, hidden = 40, 48, 32
    K = 3
    n_input_proj = 2

    kp, k1, k2 = jax.random.split(key, 3)
    params = build_params(kp, txt_dim, vid_dim, hidden, n_input_proj, K)

    src_txt = jax.random.normal(k1, (B, Lt, txt_dim), jnp.float32)
    src_txt_mask = jnp.ones((B, Lt), jnp.float32)
    src_vid = jax.random.normal(k2, (B, T, vid_dim), jnp.float32)
    src_vid_mask = jnp.ones((B, T), jnp.float32)

    out = flashvtg_forward(params, src_txt, src_txt_mask, src_vid, src_vid_mask)
    jax.block_until_ready(out["out_class"])
    jax.block_until_ready(out["sim_score"])
    jax.block_until_ready(out["vid_emb"])
    assert out["out_class"].shape == (B, T, 1)
    assert out["sim_score"].shape == (B, T)
    assert out["vid_emb"].shape == (B, T, hidden)
    assert out["src_txt"].shape == (B, Lt, hidden)
    print("KERNEL_OK")
</pallas_src>

<mosaic_0001>
module attributes {stable_mosaic.version = 11 : i64} {
  func.func @_fused_kernel(%arg0: i32, %arg1: memref<1x16x48xf32, #tpu.memory_space<vmem>>, %arg2: memref<1x8x40xf32, #tpu.memory_space<vmem>>, %arg3: memref<2x48xf32, #tpu.memory_space<vmem>>, %arg4: memref<48x32xbf16, #tpu.memory_space<vmem>>, %arg5: memref<1x32xf32, #tpu.memory_space<vmem>>, %arg6: memref<2x32xf32, #tpu.memory_space<vmem>>, %arg7: memref<32x32xbf16, #tpu.memory_space<vmem>>, %arg8: memref<1x32xf32, #tpu.memory_space<vmem>>, %arg9: memref<2x40xf32, #tpu.memory_space<vmem>>, %arg10: memref<40x32xbf16, #tpu.memory_space<vmem>>, %arg11: memref<1x32xf32, #tpu.memory_space<vmem>>, %arg12: memref<2x32xf32, #tpu.memory_space<vmem>>, %arg13: memref<32x32xbf16, #tpu.memory_space<vmem>>, %arg14: memref<1x32xf32, #tpu.memory_space<vmem>>, %arg15: memref<2x40xf32, #tpu.memory_space<vmem>>, %arg16: memref<40x32xbf16, #tpu.memory_space<vmem>>, %arg17: memref<1x32xf32, #tpu.memory_space<vmem>>, %arg18: memref<2x32xf32, #tpu.memory_space<vmem>>, %arg19: memref<32x32xbf16, #tpu.memory_space<vmem>>, %arg20: memref<1x32xf32, #tpu.memory_space<vmem>>, %arg21: memref<2x32xf32, #tpu.memory_space<vmem>>, %arg22: memref<3x32x32xbf16, #tpu.memory_space<vmem>>, %arg23: memref<1x32xf32, #tpu.memory_space<vmem>>, %arg24: memref<32x16xbf16, #tpu.memory_space<vmem>>, %arg25: memref<1x16xf32, #tpu.memory_space<vmem>>, %arg26: memref<16x16xbf16, #tpu.memory_space<vmem>>, %arg27: memref<1x16xf32, #tpu.memory_space<vmem>>, %arg28: memref<1x16xf32, #tpu.memory_space<vmem>>, %arg29: memref<1x1xf32, #tpu.memory_space<vmem>>, %arg30: memref<1x16x32xf32, #tpu.memory_space<vmem>>, %arg31: memref<1x8x32xf32, #tpu.memory_space<vmem>>, %arg32: memref<1x1x16xf32, #tpu.memory_space<vmem>>, %arg33: memref<1x1x16xf32, #tpu.memory_space<vmem>>) attributes {dimension_semantics = [#tpu.dimension_semantics<parallel>], iteration_bounds = array<i64: 2>, scalar_prefetch = 0 : i64, scratch_operands = 0 : i64, tpu.core_type = #tpu.core_type<tc>, window_params = [{transform_indices = @transform_0, window_bounds = array<i64: 1, 16, 48>}, {transform_indices = @transform_1, window_bounds = array<i64: 1, 8, 40>}, {pipeline_mode = #tpu.pipeline_mode<synchronous>, transform_indices = @transform_2, window_bounds = array<i64: 2, 48>}, {pipeline_mode = #tpu.pipeline_mode<synchronous>, transform_indices = @transform_3, window_bounds = array<i64: 48, 32>}, {pipeline_mode = #tpu.pipeline_mode<synchronous>, transform_indices = @transform_4, window_bounds = array<i64: 1, 32>}, {pipeline_mode = #tpu.pipeline_mode<synchronous>, transform_indices = @transform_5, window_bounds = array<i64: 2, 32>}, {pipeline_mode = #tpu.pipeline_mode<synchronous>, transform_indices = @transform_6, window_bounds = array<i64: 32, 32>}, {pipeline_mode = #tpu.pipeline_mode<synchronous>, transform_indices = @transform_7, window_bounds = array<i64: 1, 32>}, {pipeline_mode = #tpu.pipeline_mode<synchronous>, transform_indices = @transform_8, window_bounds = array<i64: 2, 40>}, {pipeline_mode = #tpu.pipeline_mode<synchronous>, transform_indices = @transform_9, window_bounds = array<i64: 40, 32>}, {pipeline_mode = #tpu.pipeline_mode<synchronous>, transform_indices = @transform_10, window_bounds = array<i64: 1, 32>}, {pipeline_mode = #tpu.pipeline_mode<synchronous>, transform_indices = @transform_11, window_bounds = array<i64: 2, 32>}, {pipeline_mode = #tpu.pipeline_mode<synchronous>, transform_indices = @transform_12, window_bounds = array<i64: 32, 32>}, {pipeline_mode = #tpu.pipeline_mode<synchronous>, transform_indices = @transform_13, window_bounds = array<i64: 1, 32>}, {pipeline_mode = #tpu.pipeline_mode<synchronous>, transform_indices = @transform_14, window_bounds = array<i64: 2, 40>}, {pipeline_mode = #tpu.pipeline_mode<synchronous>, transform_indices = @transform_15, window_bounds = array<i64: 40, 32>}, {pipeline_mode = #tpu.pipeline_mode<synchronous>, transform_indices = @transform_16, window_bounds = array<i64: 1, 32>}, {pipeline_mode = #tpu.pipeline_mode<synchronous>, transform_indices = @transform_17, window_bounds = array<i64: 2, 32>}, {pipeline_mode = #tpu.pipeline_mode<synchronous>, transform_indices = @transform_18, window_bounds = array<i64: 32, 32>}, {pipeline_mode = #tpu.pipeline_mode<synchronous>, transform_indices = @transform_19, window_bounds = array<i64: 1, 32>}, {pipeline_mode = #tpu.pipeline_mode<synchronous>, transform_indices = @transform_20, window_bounds = array<i64: 2, 32>}, {pipeline_mode = #tpu.pipeline_mode<synchronous>, transform_indices = @transform_21, window_bounds = array<i64: 3, 32, 32>}, {pipeline_mode = #tpu.pipeline_mode<synchronous>, transform_indices = @transform_22, window_bounds = array<i64: 1, 32>}, {pipeline_mode = #tpu.pipeline_mode<synchronous>, transform_indices = @transform_23, window_bounds = array<i64: 32, 16>}, {pipeline_mode = #tpu.pipeline_mode<synchronous>, transform_indices = @transform_24, window_bounds = array<i64: 1, 16>}, {pipeline_mode = #tpu.pipeline_mode<synchronous>, transform_indices = @transform_25, window_bounds = array<i64: 16, 16>}, {pipeline_mode = #tpu.pipeline_mode<synchronous>, transform_indices = @transform_26, window_bounds = array<i64: 1, 16>}, {pipeline_mode = #tpu.pipeline_mode<synchronous>, transform_indices = @transform_27, window_bounds = array<i64: 1, 16>}, {pipeline_mode = #tpu.pipeline_mode<synchronous>, transform_indices = @transform_28, window_bounds = array<i64: 1, 1>}, {transform_indices = @transform_29, window_bounds = array<i64: 1, 16, 32>}, {transform_indices = @transform_30, window_bounds = array<i64: 1, 8, 32>}, {transform_indices = @transform_31, window_bounds = array<i64: 1, 1, 16>}, {transform_indices = @transform_32, window_bounds = array<i64: 1, 1, 16>}]} {
    %c0 = arith.constant 0 : index
    %c0_0 = arith.constant 0 : index
    %c0_1 = arith.constant 0 : index
    %0 = vector.load %arg1[%c0, %c0_0, %c0_1] : memref<1x16x48xf32, #tpu.memory_space<vmem>>, vector<1x16x48xf32>
    %1 = vector.shape_cast %0 : vector<1x16x48xf32> to vector<16x48xf32>
    %c0_2 = arith.constant 0 : index
    %c0_3 = arith.constant 0 : index
    %c0_4 = arith.constant 0 : index
    %2 = vector.load %arg2[%c0_2, %c0_3, %c0_4] : memref<1x8x40xf32, #tpu.memory_space<vmem>>, vector<1x8x40xf32>
    %3 = vector.shape_cast %2 : vector<1x8x40xf32> to vector<8x40xf32>
    %c0_5 = arith.constant 0 : index
    %c0_6 = arith.constant 0 : index
    %4 = vector.load %arg3[%c0_5, %c0_6] : memref<2x48xf32, #tpu.memory_space<vmem>>, vector<2x48xf32>
    %c0_7 = arith.constant 0 : index
    %c0_8 = arith.constant 0 : index
    %5 = vector.load %arg5[%c0_7, %c0_8] : memref<1x32xf32, #tpu.memory_space<vmem>>, vector<1x32xf32>
    %cst = arith.constant dense<0.000000e+00> : vector<16xf32>
    %6 = vector.multi_reduction <add>, %1, %cst [1] : vector<16x48xf32> to vector<16xf32>
    %7 = vector.shape_cast %6 : vector<16xf32> to vector<16x1xf32>
    %cst_9 = arith.constant 4.800000e+01 : f32
    %8 = vector.broadcast %cst_9 : f32 to vector<16x1xf32>
    %9 = arith.divf %7, %8 : vector<16x1xf32>
    %10 = vector.broadcast %9 : vector<16x1xf32> to vector<16x48xf32>
    %11 = arith.subf %1, %10 : vector<16x48xf32>
    %12 = arith.mulf %11, %11 : vector<16x48xf32>
    %cst_10 = arith.constant dense<0.000000e+00> : vector<16xf32>
    %13 = vector.multi_reduction <add>, %12, %cst_10 [1] : vector<16x48xf32> to vector<16xf32>
    %14 = vector.shape_cast %13 : vector<16xf32> to vector<16x1xf32>
    %cst_11 = arith.constant 4.800000e+01 : f32
    %15 = vector.broadcast %cst_11 : f32 to vector<16x1xf32>
    %16 = arith.divf %14, %15 : vector<16x1xf32>
    %17 = vector.broadcast %9 : vector<16x1xf32> to vector<16x48xf32>
    %18 = arith.subf %1, %17 : vector<16x48xf32>
    %cst_12 = arith.constant 9.99999974E-6 : f32
    %19 = vector.broadcast %cst_12 : f32 to vector<16x1xf32>
    %20 = arith.addf %16, %19 : vector<16x1xf32>
    %21 = math.rsqrt %20 : vector<16x1xf32>
    %22 = vector.broadcast %21 : vector<16x1xf32> to vector<16x48xf32>
    %23 = arith.mulf %18, %22 : vector<16x48xf32>
    %24 = vector.extract_strided_slice %4 {offsets = [0, 0], sizes = [1, 48], strides = [1, 1]} : vector<2x48xf32> to vector<1x48xf32>
    %25 = vector.broadcast %24 : vector<1x48xf32> to vector<16x48xf32>
    %26 = arith.mulf %23, %25 : vector<16x48xf32>
    %27 = vector.extract_strided_slice %4 {offsets = [1, 0], sizes = [1, 48], strides = [1, 1]} : vector<2x48xf32> to vector<1x48xf32>
    %28 = vector.broadcast %27 : vector<1x48xf32> to vector<16x48xf32>
    %29 = arith.addf %26, %28 : vector<16x48xf32>
    %30 = arith.truncf %29 : vector<16x48xf32> to vector<16x48xbf16>
    %c0_13 = arith.constant 0 : index
    %c0_14 = arith.constant 0 : index
    %31 = vector.load %arg4[%c0_13, %c0_14] : memref<48x32xbf16, #tpu.memory_space<vmem>>, vector<48x32xbf16>
    %cst_15 = arith.constant dense<0.000000e+00> : vector<16x32xf32>
    %32 = tpu.matmul %30, %31, %cst_15 {dimension_numbers = #tpu.dot_dimension_numbers<[1], [0], [0], [1], [0, 0, 1, 1], [], []>} : vector<16x48xbf16>, vector<48x32xbf16>, vector<16x32xf32> -> vector<16x32xf32>
    %33 = vector.broadcast %5 : vector<1x32xf32> to vector<16x32xf32>
    %34 = arith.addf %32, %33 : vector<16x32xf32>
    %cst_16 = arith.constant 0.000000e+00 : f32
    %35 = vector.broadcast %cst_16 : f32 to vector<16x32xf32>
    %36 = arith.maximumf %34, %35 : vector<16x32xf32>
    %c0_17 = arith.constant 0 : index
    %c0_18 = arith.constant 0 : index
    %37 = vector.load %arg6[%c0_17, %c0_18] : memref<2x32xf32, #tpu.memory_space<vmem>>, vector<2x32xf32>
    %c0_19 = arith.constant 0 : index
    %c0_20 = arith.constant 0 : index
    %38 = vector.load %arg8[%c0_19, %c0_20] : memref<1x32xf32, #tpu.memory_space<vmem>>, vector<1x32xf32>
    %cst_21 = arith.constant dense<0.000000e+00> : vector<16xf32>
    %39 = vector.multi_reduction <add>, %36, %cst_21 [1] : vector<16x32xf32> to vector<16xf32>
    %40 = vector.shape_cast %39 : vector<16xf32> to vector<16x1xf32>
    %cst_22 = arith.constant 3.200000e+01 : f32
    %41 = vector.broadcast %cst_22 : f32 to vector<16x1xf32>
    %42 = arith.divf %40, %41 : vector<16x1xf32>
    %43 = vector.broadcast %42 : vector<16x1xf32> to vector<16x32xf32>
    %44 = arith.subf %36, %43 : vector<16x32xf32>
    %45 = arith.mulf %44, %44 : vector<16x32xf32>
    %cst_23 = arith.constant dense<0.000000e+00> : vector<16xf32>
    %46 = vector.multi_reduction <add>, %45, %cst_23 [1] : vector<16x32xf32> to vector<16xf32>
    %47 = vector.shape_cast %46 : vector<16xf32> to vector<16x1xf32>
    %cst_24 = arith.constant 3.200000e+01 : f32
    %48 = vector.broadcast %cst_24 : f32 to vector<16x1xf32>
    %49 = arith.divf %47, %48 : vector<16x1xf32>
    %50 = vector.broadcast %42 : vector<16x1xf32> to vector<16x32xf32>
    %51 = arith.subf %36, %50 : vector<16x32xf32>
    %cst_25 = arith.constant 9.99999974E-6 : f32
    %52 = vector.broadcast %cst_25 : f32 to vector<16x1xf32>
    %53 = arith.addf %49, %52 : vector<16x1xf32>
    %54 = math.rsqrt %53 : vector<16x1xf32>
    %55 = vector.broadcast %54 : vector<16x1xf32> to vector<16x32xf32>
    %56 = arith.mulf %51, %55 : vector<16x32xf32>
    %57 = vector.extract_strided_slice %37 {offsets = [0, 0], sizes = [1, 32], strides = [1, 1]} : vector<2x32xf32> to vector<1x32xf32>
    %58 = vector.broadcast %57 : vector<1x32xf32> to vector<16x32xf32>
    %59 = arith.mulf %56, %58 : vector<16x32xf32>
    %60 = vector.extract_strided_slice %37 {offsets = [1, 0], sizes = [1, 32], strides = [1, 1]} : vector<2x32xf32> to vector<1x32xf32>
    %61 = vector.broadcast %60 : vector<1x32xf32> to vector<16x32xf32>
    %62 = arith.addf %59, %61 : vector<16x32xf32>
    %63 = arith.truncf %62 : vector<16x32xf32> to vector<16x32xbf16>
    %c0_26 = arith.constant 0 : index
    %c0_27 = arith.constant 0 : index
    %64 = vector.load %arg7[%c0_26, %c0_27] : memref<32x32xbf16, #tpu.memory_space<vmem>>, vector<32x32xbf16>
    %cst_28 = arith.constant dense<0.000000e+00> : vector<16x32xf32>
    %65 = tpu.matmul %63, %64, %cst_28 {dimension_numbers = #tpu.dot_dimension_numbers<[1], [0], [0], [1], [0, 0, 1, 1], [], []>} : vector<16x32xbf16>, vector<32x32xbf16>, vector<16x32xf32> -> vector<16x32xf32>
    %66 = vector.broadcast %38 : vector<1x32xf32> to vector<16x32xf32>
    %67 = arith.addf %65, %66 : vector<16x32xf32>
    %c0_29 = arith.constant 0 : index
    %c0_30 = arith.constant 0 : index
    %68 = vector.load %arg9[%c0_29, %c0_30] : memref<2x40xf32, #tpu.memory_space<vmem>>, vector<2x40xf32>
    %c0_31 = arith.constant 0 : index
    %c0_32 = arith.constant 0 : index
    %69 = vector.load %arg11[%c0_31, %c0_32] : memref<1x32xf32, #tpu.memory_space<vmem>>, vector<1x32xf32>
    %cst_33 = arith.constant dense<0.000000e+00> : vector<8xf32>
    %70 = vector.multi_reduction <add>, %3, %cst_33 [1] : vector<8x40xf32> to vector<8xf32>
    %71 = vector.shape_cast %70 : vector<8xf32> to vector<8x1xf32>
    %cst_34 = arith.constant 4.000000e+01 : f32
    %72 = vector.broadcast %cst_34 : f32 to vector<8x1xf32>
    %73 = arith.divf %71, %72 : vector<8x1xf32>
    %74 = vector.broadcast %73 : vector<8x1xf32> to vector<8x40xf32>
    %75 = arith.subf %3, %74 : vector<8x40xf32>
    %76 = arith.mulf %75, %75 : vector<8x40xf32>
    %cst_35 = arith.constant dense<0.000000e+00> : vector<8xf32>
    %77 = vector.multi_reduction <add>, %76, %cst_35 [1] : vector<8x40xf32> to vector<8xf32>
    %78 = vector.shape_cast %77 : vector<8xf32> to vector<8x1xf32>
    %cst_36 = arith.constant 4.000000e+01 : f32
    %79 = vector.broadcast %cst_36 : f32 to vector<8x1xf32>
    %80 = arith.divf %78, %79 : vector<8x1xf32>
    %81 = vector.broadcast %73 : vector<8x1xf32> to vector<8x40xf32>
    %82 = arith.subf %3, %81 : vector<8x40xf32>
    %cst_37 = arith.constant 9.99999974E-6 : f32
    %83 = vector.broadcast %cst_37 : f32 to vector<8x1xf32>
    %84 = arith.addf %80, %83 : vector<8x1xf32>
    %85 = math.rsqrt %84 : vector<8x1xf32>
    %86 = vector.broadcast %85 : vector<8x1xf32> to vector<8x40xf32>
    %87 = arith.mulf %82, %86 : vector<8x40xf32>
    %88 = vector.extract_strided_slice %68 {offsets = [0, 0], sizes = [1, 40], strides = [1, 1]} : vector<2x40xf32> to vector<1x40xf32>
    %89 = vector.broadcast %88 : vector<1x40xf32> to vector<8x40xf32>
    %90 = arith.mulf %87, %89 : vector<8x40xf32>
    %91 = vector.extract_strided_slice %68 {offsets = [1, 0], sizes = [1, 40], strides = [1, 1]} : vector<2x40xf32> to vector<1x40xf32>
    %92 = vector.broadcast %91 : vector<1x40xf32> to vector<8x40xf32>
    %93 = arith.addf %90, %92 : vector<8x40xf32>
    %94 = arith.truncf %93 : vector<8x40xf32> to vector<8x40xbf16>
    %c0_38 = arith.constant 0 : index
    %c0_39 = arith.constant 0 : index
    %95 = vector.load %arg10[%c0_38, %c0_39] : memref<40x32xbf16, #tpu.memory_space<vmem>>, vector<40x32xbf16>
    %cst_40 = arith.constant dense<0.000000e+00> : vector<8x32xf32>
    %96 = tpu.matmul %94, %95, %cst_40 {dimension_numbers = #tpu.dot_dimension_numbers<[1], [0], [0], [1], [0, 0, 1, 1], [], []>} : vector<8x40xbf16>, vector<40x32xbf16>, vector<8x32xf32> -> vector<8x32xf32>
    %97 = vector.broadcast %69 : vector<1x32xf32> to vector<8x32xf32>
    %98 = arith.addf %96, %97 : vector<8x32xf32>
    %cst_41 = arith.constant 0.000000e+00 : f32
    %99 = vector.broadcast %cst_41 : f32 to vector<8x32xf32>
    %100 = arith.maximumf %98, %99 : vector<8x32xf32>
    %c0_42 = arith.constant 0 : index
    %c0_43 = arith.constant 0 : index
    %101 = vector.load %arg12[%c0_42, %c0_43] : memref<2x32xf32, #tpu.memory_space<vmem>>, vector<2x32xf32>
    %c0_44 = arith.constant 0 : index
    %c0_45 = arith.constant 0 : index
    %102 = vector.load %arg14[%c0_44, %c0_45] : memref<1x32xf32, #tpu.memory_space<vmem>>, vector<1x32xf32>
    %cst_46 = arith.constant dense<0.000000e+00> : vector<8xf32>
    %103 = vector.multi_reduction <add>, %100, %cst_46 [1] : vector<8x32xf32> to vector<8xf32>
    %104 = vector.shape_cast %103 : vector<8xf32> to vector<8x1xf32>
    %cst_47 = arith.constant 3.200000e+01 : f32
    %105 = vector.broadcast %cst_47 : f32 to vector<8x1xf32>
    %106 = arith.divf %104, %105 : vector<8x1xf32>
    %107 = vector.broadcast %106 : vector<8x1xf32> to vector<8x32xf32>
    %108 = arith.subf %100, %107 : vector<8x32xf32>
    %109 = arith.mulf %108, %108 : vector<8x32xf32>
    %cst_48 = arith.constant dense<0.000000e+00> : vector<8xf32>
    %110 = vector.multi_reduction <add>, %109, %cst_48 [1] : vector<8x32xf32> to vector<8xf32>
    %111 = vector.shape_cast %110 : vector<8xf32> to vector<8x1xf32>
    %cst_49 = arith.constant 3.200000e+01 : f32
    %112 = vector.broadcast %cst_49 : f32 to vector<8x1xf32>
    %113 = arith.divf %111, %112 : vector<8x1xf32>
    %114 = vector.broadcast %106 : vector<8x1xf32> to vector<8x32xf32>
    %115 = arith.subf %100, %114 : vector<8x32xf32>
    %cst_50 = arith.constant 9.99999974E-6 : f32
    %116 = vector.broadcast %cst_50 : f32 to vector<8x1xf32>
    %117 = arith.addf %113, %116 : vector<8x1xf32>
    %118 = math.rsqrt %117 : vector<8x1xf32>
    %119 = vector.broadcast %118 : vector<8x1xf32> to vector<8x32xf32>
    %120 = arith.mulf %115, %119 : vector<8x32xf32>
    %121 = vector.extract_strided_slice %101 {offsets = [0, 0], sizes = [1, 32], strides = [1, 1]} : vector<2x32xf32> to vector<1x32xf32>
    %122 = vector.broadcast %121 : vector<1x32xf32> to vector<8x32xf32>
    %123 = arith.mulf %120, %122 : vector<8x32xf32>
    %124 = vector.extract_strided_slice %101 {offsets = [1, 0], sizes = [1, 32], strides = [1, 1]} : vector<2x32xf32> to vector<1x32xf32>
    %125 = vector.broadcast %124 : vector<1x32xf32> to vector<8x32xf32>
    %126 = arith.addf %123, %125 : vector<8x32xf32>
    %127 = arith.truncf %126 : vector<8x32xf32> to vector<8x32xbf16>
    %c0_51 = arith.constant 0 : index
    %c0_52 = arith.constant 0 : index
    %128 = vector.load %arg13[%c0_51, %c0_52] : memref<32x32xbf16, #tpu.memory_space<vmem>>, vector<32x32xbf16>
    %cst_53 = arith.constant dense<0.000000e+00> : vector<8x32xf32>
    %129 = tpu.matmul %127, %128, %cst_53 {dimension_numbers = #tpu.dot_dimension_numbers<[1], [0], [0], [1], [0, 0, 1, 1], [], []>} : vector<8x32xbf16>, vector<32x32xbf16>, vector<8x32xf32> -> vector<8x32xf32>
    %130 = vector.broadcast %102 : vector<1x32xf32> to vector<8x32xf32>
    %131 = arith.addf %129, %130 : vector<8x32xf32>
    %c0_54 = arith.constant 0 : index
    %c0_55 = arith.constant 0 : index
    %132 = vector.load %arg15[%c0_54, %c0_55] : memref<2x40xf32, #tpu.memory_space<vmem>>, vector<2x40xf32>
    %c0_56 = arith.constant 0 : index
    %c0_57 = arith.constant 0 : index
    %133 = vector.load %arg17[%c0_56, %c0_57] : memref<1x32xf32, #tpu.memory_space<vmem>>, vector<1x32xf32>
    %cst_58 = arith.constant dense<0.000000e+00> : vector<8xf32>
    %134 = vector.multi_reduction <add>, %3, %cst_58 [1] : vector<8x40xf32> to vector<8xf32>
    %135 = vector.shape_cast %134 : vector<8xf32> to vector<8x1xf32>
    %cst_59 = arith.constant 4.000000e+01 : f32
    %136 = vector.broadcast %cst_59 : f32 to vector<8x1xf32>
    %137 = arith.divf %135, %136 : vector<8x1xf32>
    %138 = vector.broadcast %137 : vector<8x1xf32> to vector<8x40xf32>
    %139 = arith.subf %3, %138 : vector<8x40xf32>
    %140 = arith.mulf %139, %139 : vector<8x40xf32>
    %cst_60 = arith.constant dense<0.000000e+00> : vector<8xf32>
    %141 = vector.multi_reduction <add>, %140, %cst_60 [1] : vector<8x40xf32> to vector<8xf32>
    %142 = vector.shape_cast %141 : vector<8xf32> to vector<8x1xf32>
    %cst_61 = arith.constant 4.000000e+01 : f32
    %143 = vector.broadcast %cst_61 : f32 to vector<8x1xf32>
    %144 = arith.divf %142, %143 : vector<8x1xf32>
    %145 = vector.broadcast %137 : vector<8x1xf32> to vector<8x40xf32>
    %146 = arith.subf %3, %145 : vector<8x40xf32>
    %cst_62 = arith.constant 9.99999974E-6 : f32
    %147 = vector.broadcast %cst_62 : f32 to vector<8x1xf32>
    %148 = arith.addf %144, %147 : vector<8x1xf32>
    %149 = math.rsqrt %148 : vector<8x1xf32>
    %150 = vector.broadcast %149 : vector<8x1xf32> to vector<8x40xf32>
    %151 = arith.mulf %146, %150 : vector<8x40xf32>
    %152 = vector.extract_strided_slice %132 {offsets = [0, 0], sizes = [1, 40], strides = [1, 1]} : vector<2x40xf32> to vector<1x40xf32>
    %153 = vector.broadcast %152 : vector<1x40xf32> to vector<8x40xf32>
    %154 = arith.mulf %151, %153 : vector<8x40xf32>
    %155 = vector.extract_strided_slice %132 {offsets = [1, 0], sizes = [1, 40], strides = [1, 1]} : vector<2x40xf32> to vector<1x40xf32>
    %156 = vector.broadcast %155 : vector<1x40xf32> to vector<8x40xf32>
    %157 = arith.addf %154, %156 : vector<8x40xf32>
    %158 = arith.truncf %157 : vector<8x40xf32> to vector<8x40xbf16>
    %c0_63 = arith.constant 0 : index
    %c0_64 = arith.constant 0 : index
    %159 = vector.load %arg16[%c0_63, %c0_64] : memref<40x32xbf16, #tpu.memory_space<vmem>>, vector<40x32xbf16>
    %cst_65 = arith.constant dense<0.000000e+00> : vector<8x32xf32>
    %160 = tpu.matmul %158, %159, %cst_65 {dimension_numbers = #tpu.dot_dimension_numbers<[1], [0], [0], [1], [0, 0, 1, 1], [], []>} : vector<8x40xbf16>, vector<40x32xbf16>, vector<8x32xf32> -> vector<8x32xf32>
    %161 = vector.broadcast %133 : vector<1x32xf32> to vector<8x32xf32>
    %162 = arith.addf %160, %161 : vector<8x32xf32>
    %cst_66 = arith.constant 0.000000e+00 : f32
    %163 = vector.broadcast %cst_66 : f32 to vector<8x32xf32>
    %164 = arith.maximumf %162, %163 : vector<8x32xf32>
    %c0_67 = arith.constant 0 : index
    %c0_68 = arith.constant 0 : index
    %165 = vector.load %arg18[%c0_67, %c0_68] : memref<2x32xf32, #tpu.memory_space<vmem>>, vector<2x32xf32>
    %c0_69 = arith.constant 0 : index
    %c0_70 = arith.constant 0 : index
    %166 = vector.load %arg20[%c0_69, %c0_70] : memref<1x32xf32, #tpu.memory_space<vmem>>, vector<1x32xf32>
    %cst_71 = arith.constant dense<0.000000e+00> : vector<8xf32>
    %167 = vector.multi_reduction <add>, %164, %cst_71 [1] : vector<8x32xf32> to vector<8xf32>
    %168 = vector.shape_cast %167 : vector<8xf32> to vector<8x1xf32>
    %cst_72 = arith.constant 3.200000e+01 : f32
    %169 = vector.broadcast %cst_72 : f32 to vector<8x1xf32>
    %170 = arith.divf %168, %169 : vector<8x1xf32>
    %171 = vector.broadcast %170 : vector<8x1xf32> to vector<8x32xf32>
    %172 = arith.subf %164, %171 : vector<8x32xf32>
    %173 = arith.mulf %172, %172 : vector<8x32xf32>
    %cst_73 = arith.constant dense<0.000000e+00> : vector<8xf32>
    %174 = vector.multi_reduction <add>, %173, %cst_73 [1] : vector<8x32xf32> to vector<8xf32>
    %175 = vector.shape_cast %174 : vector<8xf32> to vector<8x1xf32>
    %cst_74 = arith.constant 3.200000e+01 : f32
    %176 = vector.broadcast %cst_74 : f32 to vector<8x1xf32>
    %177 = arith.divf %175, %176 : vector<8x1xf32>
    %178 = vector.broadcast %170 : vector<8x1xf32> to vector<8x32xf32>
    %179 = arith.subf %164, %178 : vector<8x32xf32>
    %cst_75 = arith.constant 9.99999974E-6 : f32
    %180 = vector.broadcast %cst_75 : f32 to vector<8x1xf32>
    %181 = arith.addf %177, %180 : vector<8x1xf32>
    %182 = math.rsqrt %181 : vector<8x1xf32>
    %183 = vector.broadcast %182 : vector<8x1xf32> to vector<8x32xf32>
    %184 = arith.mulf %179, %183 : vector<8x32xf32>
    %185 = vector.extract_strided_slice %165 {offsets = [0, 0], sizes = [1, 32], strides = [1, 1]} : vector<2x32xf32> to vector<1x32xf32>
    %186 = vector.broadcast %185 : vector<1x32xf32> to vector<8x32xf32>
    %187 = arith.mulf %184, %186 : vector<8x32xf32>
    %188 = vector.extract_strided_slice %165 {offsets = [1, 0], sizes = [1, 32], strides = [1, 1]} : vector<2x32xf32> to vector<1x32xf32>
    %189 = vector.broadcast %188 : vector<1x32xf32> to vector<8x32xf32>
    %190 = arith.addf %187, %189 : vector<8x32xf32>
    %191 = arith.truncf %190 : vector<8x32xf32> to vector<8x32xbf16>
    %c0_76 = arith.constant 0 : index
    %c0_77 = arith.constant 0 : index
    %192 = vector.load %arg19[%c0_76, %c0_77] : memref<32x32xbf16, #tpu.memory_space<vmem>>, vector<32x32xbf16>
    %cst_78 = arith.constant dense<0.000000e+00> : vector<8x32xf32>
    %193 = tpu.matmul %191, %192, %cst_78 {dimension_numbers = #tpu.dot_dimension_numbers<[1], [0], [0], [1], [0, 0, 1, 1], [], []>} : vector<8x32xbf16>, vector<32x32xbf16>, vector<8x32xf32> -> vector<8x32xf32>
    %194 = vector.broadcast %166 : vector<1x32xf32> to vector<8x32xf32>
    %195 = arith.addf %193, %194 : vector<8x32xf32>
    %196 = tpu.iota {dimensions = array<i32: 0>} : vector<8x1xi32>
    %c0_i32 = arith.constant 0 : i32
    %197 = vector.broadcast %c0_i32 : i32 to vector<8x1xi32>
    %198 = arith.cmpi eq, %196, %197 : vector<8x1xi32>
    %199 = vector.shape_cast %198 : vector<8x1xi1> to vector<8x1xi1>
    %200 = vector.broadcast %199 : vector<8x1xi1> to vector<8x32xi1>
    %201 = arith.select %200, %131, %195 : vector<8x32xi1>, vector<8x32xf32>
    %202 = vector.extract_strided_slice %131 {offsets = [0, 0], sizes = [1, 32], strides = [1, 1]} : vector<8x32xf32> to vector<1x32xf32>
    %c1 = arith.constant 1 : index
    %c0_79 = arith.constant 0 : index
    %203 = vector.load %arg21[%c1, %c0_79] : memref<2x32xf32, #tpu.memory_space<vmem>>, vector<1x32xf32>
    %204 = vector.broadcast %203 : vector<1x32xf32> to vector<16x32xf32>
    %205 = arith.addf %67, %204 : vector<16x32xf32>
    %c0_80 = arith.constant 0 : index
    %c0_81 = arith.constant 0 : index
    %206 = vector.load %arg21[%c0_80, %c0_81] : memref<2x32xf32, #tpu.memory_space<vmem>>, vector<1x32xf32>
    %207 = vector.broadcast %206 : vector<1x32xf32> to vector<8x32xf32>
    %208 = arith.addf %201, %207 : vector<8x32xf32>
    %c0_82 = arith.constant 0 : index
    %c0_83 = arith.constant 0 : index
    %c0_84 = arith.constant 0 : index
    %209 = vector.load %arg30[%c0_82, %c0_83, %c0_84] : memref<1x16x32xf32, #tpu.memory_space<vmem>>, vector<1x16x32xf32>
    %210 = vector.shape_cast %209 : vector<1x16x32xf32> to vector<16x32xf32>
    %211 = vector.shape_cast %205 : vector<16x32xf32> to vector<1x16x32xf32>
    tpu.vector_store %arg30[%c0_82, %c0_83, %c0_84], %211 {strides = array<i32>} : memref<1x16x32xf32, #tpu.memory_space<vmem>>, vector<1x16x32xf32>,
    %c0_85 = arith.constant 0 : index
    %c0_86 = arith.constant 0 : index
    %c0_87 = arith.constant 0 : index
    %212 = vector.load %arg31[%c0_85, %c0_86, %c0_87] : memref<1x8x32xf32, #tpu.memory_space<vmem>>, vector<1x8x32xf32>
    %213 = vector.shape_cast %212 : vector<1x8x32xf32> to vector<8x32xf32>
    %214 = vector.shape_cast %208 : vector<8x32xf32> to vector<1x8x32xf32>
    tpu.vector_store %arg31[%c0_85, %c0_86, %c0_87], %214 {strides = array<i32>} : memref<1x8x32xf32, #tpu.memory_space<vmem>>, vector<1x8x32xf32>,
    %cst_88 = arith.constant dense<0.000000e+00> : vector<1x16xf32>
    %215 = tpu.matmul %202, %205, %cst_88 {dimension_numbers = #tpu.dot_dimension_numbers<[1], [1], [0], [0], [0, 0, 1, 0], [], []>} : vector<1x32xf32>, vector<16x32xf32>, vector<1x16xf32> -> vector<1x16xf32>
    %cst_89 = arith.constant 1.000000e+00 : f32
    %216 = vector.broadcast %cst_89 : f32 to vector<1x32xf32>
    %217 = arith.mulf %205, %205 : vector<16x32xf32>
    %cst_90 = arith.constant dense<0.000000e+00> : vector<1x16xf32>
    %218 = tpu.matmul %216, %217, %cst_90 {dimension_numbers = #tpu.dot_dimension_numbers<[1], [1], [0], [0], [0, 0, 1, 0], [], []>} : vector<1x32xf32>, vector<16x32xf32>, vector<1x16xf32> -> vector<1x16xf32>
    %219 = arith.mulf %202, %202 : vector<1x32xf32>
    %cst_91 = arith.constant dense<0.000000e+00> : vector<1xf32>
    %220 = vector.multi_reduction <add>, %219, %cst_91 [1] : vector<1x32xf32> to vector<1xf32>
    %221 = vector.shape_cast %220 : vector<1xf32> to vector<1x1xf32>
    %222 = math.sqrt %218 : vector<1x16xf32>
    %cst_92 = arith.constant 9.99999993E-9 : f32
    %223 = vector.broadcast %cst_92 : f32 to vector<1x16xf32>
    %224 = arith.maximumf %222, %223 : vector<1x16xf32>
    %225 = math.sqrt %221 : vector<1x1xf32>
    %cst_93 = arith.constant 9.99999993E-9 : f32
    %226 = vector.broadcast %cst_93 : f32 to vector<1x1xf32>
    %227 = arith.maximumf %225, %226 : vector<1x1xf32>
    %228 = vector.broadcast %227 : vector<1x1xf32> to vector<1x16xf32>
    %229 = arith.mulf %224, %228 : vector<1x16xf32>
    %230 = tpu.reciprocal %229 {approx = true} : vector<1x16xf32> -> vector<1x16xf32>
    %231 = arith.mulf %215, %230 : vector<1x16xf32>
    %c0_94 = arith.constant 0 : index
    %c0_95 = arith.constant 0 : index
    %c0_96 = arith.constant 0 : index
    %232 = vector.load %arg32[%c0_94, %c0_95, %c0_96] : memref<1x1x16xf32, #tpu.memory_space<vmem>>, vector<1x1x16xf32>
    %233 = vector.shape_cast %232 : vector<1x1x16xf32> to vector<1x16xf32>
    %234 = vector.shape_cast %231 : vector<1x16xf32> to vector<1x1x16xf32>
    tpu.vector_store %arg32[%c0_94, %c0_95, %c0_96], %234 {strides = array<i32>} : memref<1x1x16xf32, #tpu.memory_space<vmem>>, vector<1x1x16xf32>,
    %235 = tpu.iota {dimensions = array<i32: 0>} : vector<16x1xi32>
    %cst_97 = arith.constant 0.000000e+00 : f32
    %236 = vector.broadcast %cst_97 : f32 to vector<16x32xf32>
    %c1_i32 = arith.constant 1 : i32
    %237 = tpu.dynamic_rotate %205 by %c1_i32 dim 0 : vector<16x32xf32>, i32 -> vector<16x32xf32>
    %c-1_i32 = arith.constant -1 : i32
    %238 = vector.broadcast %c-1_i32 : i32 to vector<16x1xi32>
    %239 = arith.addi %235, %238 : vector<16x1xi32>
    %c0_i32_98 = arith.constant 0 : i32
    %240 = vector.broadcast %c0_i32_98 : i32 to vector<16x1xi32>
    %241 = arith.cmpi sge, %239, %240 : vector<16x1xi32>
    %c-1_i32_99 = arith.constant -1 : i32
    %242 = vector.broadcast %c-1_i32_99 : i32 to vector<16x1xi32>
    %243 = arith.addi %235, %242 : vector<16x1xi32>
    %c16_i32 = arith.constant 16 : i32
    %244 = vector.broadcast %c16_i32 : i32 to vector<16x1xi32>
    %245 = arith.cmpi slt, %243, %244 : vector<16x1xi32>
    %246 = arith.andi %241, %245 : vector<16x1xi1>
    %cst_100 = arith.constant 0.000000e+00 : f32
    %247 = vector.shape_cast %246 : vector<16x1xi1> to vector<16x1xi1>
    %248 = vector.broadcast %247 : vector<16x1xi1> to vector<16x32xi1>
    %249 = vector.broadcast %cst_100 : f32 to vector<16x32xf32>
    %250 = arith.select %248, %237, %249 : vector<16x32xi1>, vector<16x32xf32>
    %251 = arith.truncf %250 : vector<16x32xf32> to vector<16x32xbf16>
    %c0_101 = arith.constant 0 : index
    %c0_102 = arith.constant 0 : index
    %c0_103 = arith.constant 0 : index
    %252 = vector.load %arg22[%c0_101, %c0_102, %c0_103] : memref<3x32x32xbf16, #tpu.memory_space<vmem>>, vector<1x32x32xbf16>
    %253 = vector.shape_cast %252 : vector<1x32x32xbf16> to vector<32x32xbf16>
    %cst_104 = arith.constant dense<0.000000e+00> : vector<16x32xf32>
    %254 = tpu.matmul %251, %253, %cst_104 {dimension_numbers = #tpu.dot_dimension_numbers<[1], [0], [0], [1], [0, 0, 1, 1], [], []>} : vector<16x32xbf16>, vector<32x32xbf16>, vector<16x32xf32> -> vector<16x32xf32>
    %255 = arith.addf %236, %254 : vector<16x32xf32>
    %256 = arith.truncf %205 : vector<16x32xf32> to vector<16x32xbf16>
    %c1_105 = arith.constant 1 : index
    %c0_106 = arith.constant 0 : index
    %c0_107 = arith.constant 0 : index
    %257 = vector.load %arg22[%c1_105, %c0_106, %c0_107] : memref<3x32x32xbf16, #tpu.memory_space<vmem>>, vector<1x32x32xbf16>
    %258 = vector.shape_cast %257 : vector<1x32x32xbf16> to vector<32x32xbf16>
    %cst_108 = arith.constant dense<0.000000e+00> : vector<16x32xf32>
    %259 = tpu.matmul %256, %258, %cst_108 {dimension_numbers = #tpu.dot_dimension_numbers<[1], [0], [0], [1], [0, 0, 1, 1], [], []>} : vector<16x32xbf16>, vector<32x32xbf16>, vector<16x32xf32> -> vector<16x32xf32>
    %260 = arith.addf %255, %259 : vector<16x32xf32>
    %c15_i32 = arith.constant 15 : i32
    %261 = tpu.dynamic_rotate %205 by %c15_i32 dim 0 : vector<16x32xf32>, i32 -> vector<16x32xf32>
    %c1_i32_109 = arith.constant 1 : i32
    %262 = vector.broadcast %c1_i32_109 : i32 to vector<16x1xi32>
    %263 = arith.addi %235, %262 : vector<16x1xi32>
    %c0_i32_110 = arith.constant 0 : i32
    %264 = vector.broadcast %c0_i32_110 : i32 to vector<16x1xi32>
    %265 = arith.cmpi sge, %263, %264 : vector<16x1xi32>
    %c1_i32_111 = arith.constant 1 : i32
    %266 = vector.broadcast %c1_i32_111 : i32 to vector<16x1xi32>
    %267 = arith.addi %235, %266 : vector<16x1xi32>
    %c16_i32_112 = arith.constant 16 : i32
    %268 = vector.broadcast %c16_i32_112 : i32 to vector<16x1xi32>
    %269 = arith.cmpi slt, %267, %268 : vector<16x1xi32>
    %270 = arith.andi %265, %269 : vector<16x1xi1>
    %cst_113 = arith.constant 0.000000e+00 : f32
    %271 = vector.shape_cast %270 : vector<16x1xi1> to vector<16x1xi1>
    %272 = vector.broadcast %271 : vector<16x1xi1> to vector<16x32xi1>
    %273 = vector.broadcast %cst_113 : f32 to vector<16x32xf32>
    %274 = arith.select %272, %261, %273 : vector<16x32xi1>, vector<16x32xf32>
    %275 = arith.truncf %274 : vector<16x32xf32> to vector<16x32xbf16>
    %c2 = arith.constant 2 : index
    %c0_114 = arith.constant 0 : index
    %c0_115 = arith.constant 0 : index
    %276 = vector.load %arg22[%c2, %c0_114, %c0_115] : memref<3x32x32xbf16, #tpu.memory_space<vmem>>, vector<1x32x32xbf16>
    %277 = vector.shape_cast %276 : vector<1x32x32xbf16> to vector<32x32xbf16>
    %cst_116 = arith.constant dense<0.000000e+00> : vector<16x32xf32>
    %278 = tpu.matmul %275, %277, %cst_116 {dimension_numbers = #tpu.dot_dimension_numbers<[1], [0], [0], [1], [0, 0, 1, 1], [], []>} : vector<16x32xbf16>, vector<32x32xbf16>, vector<16x32xf32> -> vector<16x32xf32>
    %279 = arith.addf %260, %278 : vector<16x32xf32>
    %c0_117 = arith.constant 0 : index
    %c0_118 = arith.constant 0 : index
    %280 = vector.load %arg23[%c0_117, %c0_118] : memref<1x32xf32, #tpu.memory_space<vmem>>, vector<1x32xf32>
    %281 = vector.broadcast %280 : vector<1x32xf32> to vector<16x32xf32>
    %282 = arith.addf %279, %281 : vector<16x32xf32>
    %cst_119 = arith.constant 0.000000e+00 : f32
    %283 = vector.broadcast %cst_119 : f32 to vector<16x32xf32>
    %284 = arith.maximumf %282, %283 : vector<16x32xf32>
    %285 = arith.truncf %284 : vector<16x32xf32> to vector<16x32xbf16>
    %c0_120 = arith.constant 0 : index
    %c0_121 = arith.constant 0 : index
    %286 = vector.load %arg24[%c0_120, %c0_121] : memref<32x16xbf16, #tpu.memory_space<vmem>>, vector<32x16xbf16>
    %cst_122 = arith.constant dense<0.000000e+00> : vector<16x16xf32>
    %287 = tpu.matmul %285, %286, %cst_122 {dimension_numbers = #tpu.dot_dimension_numbers<[1], [0], [0], [1], [0, 0, 1, 1], [], []>} : vector<16x32xbf16>, vector<32x16xbf16>, vector<16x16xf32> -> vector<16x16xf32>
    %c0_123 = arith.constant 0 : index
    %c0_124 = arith.constant 0 : index
    %288 = vector.load %arg25[%c0_123, %c0_124] : memref<1x16xf32, #tpu.memory_space<vmem>>, vector<1x16xf32>
    %289 = vector.broadcast %288 : vector<1x16xf32> to vector<16x16xf32>
    %290 = arith.addf %287, %289 : vector<16x16xf32>
    %cst_125 = arith.constant 0.000000e+00 : f32
    %291 = vector.broadcast %cst_125 : f32 to vector<16x16xf32>
    %292 = arith.maximumf %290, %291 : vector<16x16xf32>
    %293 = arith.truncf %292 : vector<16x16xf32> to vector<16x16xbf16>
    %c0_126 = arith.constant 0 : index
    %c0_127 = arith.constant 0 : index
    %294 = vector.load %arg26[%c0_126, %c0_127] : memref<16x16xbf16, #tpu.memory_space<vmem>>, vector<16x16xbf16>
    %cst_128 = arith.constant dense<0.000000e+00> : vector<16x16xf32>
    %295 = tpu.matmul %293, %294, %cst_128 {dimension_numbers = #tpu.dot_dimension_numbers<[1], [0], [0], [1], [0, 0, 1, 1], [], []>} : vector<16x16xbf16>, vector<16x16xbf16>, vector<16x16xf32> -> vector<16x16xf32>
    %c0_129 = arith.constant 0 : index
    %c0_130 = arith.constant 0 : index
    %296 = vector.load %arg27[%c0_129, %c0_130] : memref<1x16xf32, #tpu.memory_space<vmem>>, vector<1x16xf32>
    %297 = vector.broadcast %296 : vector<1x16xf32> to vector<16x16xf32>
    %298 = arith.addf %295, %297 : vector<16x16xf32>
    %cst_131 = arith.constant 0.000000e+00 : f32
    %299 = vector.broadcast %cst_131 : f32 to vector<16x16xf32>
    %300 = arith.maximumf %298, %299 : vector<16x16xf32>
    %c0_132 = arith.constant 0 : index
    %c0_133 = arith.constant 0 : index
    %301 = vector.load %arg28[%c0_132, %c0_133] : memref<1x16xf32, #tpu.memory_space<vmem>>, vector<1x16xf32>
    %cst_134 = arith.constant dense<0.000000e+00> : vector<1x16xf32>
    %302 = tpu.matmul %301, %300, %cst_134 {dimension_numbers = #tpu.dot_dimension_numbers<[1], [1], [0], [0], [0, 0, 1, 0], [], []>} : vector<1x16xf32>, vector<16x16xf32>, vector<1x16xf32> -> vector<1x16xf32>
    %c0_135 = arith.constant 0 : index
    %c0_136 = arith.constant 0 : index
    %303 = vector.load %arg29[%c0_135, %c0_136] : memref<1x1xf32, #tpu.memory_space<vmem>>, vector<1x1xf32>
    %304 = vector.broadcast %303 : vector<1x1xf32> to vector<1x16xf32>
    %305 = arith.addf %302, %304 : vector<1x16xf32>
    %c0_137 = arith.constant 0 : index
    %c0_138 = arith.constant 0 : index
    %c0_139 = arith.constant 0 : index
    %306 = vector.load %arg33[%c0_137, %c0_138, %c0_139] : memref<1x1x16xf32, #tpu.memory_space<vmem>>, vector<1x1x16xf32>
    %307 = vector.shape_cast %306 : vector<1x1x16xf32> to vector<1x16xf32>
    %308 = vector.shape_cast %305 : vector<1x16xf32> to vector<1x1x16xf32>
    tpu.vector_store %arg33[%c0_137, %c0_138, %c0_139], %308 {strides = array<i32>} : memref<1x1x16xf32, #tpu.memory_space<vmem>>, vector<1x1x16xf32>,
    return
  }
  func.func @transform_0(%arg0: i32) -> (i32, i32, i32) {
    %c0_i32 = arith.constant 0 : i32
    %c0_i32_0 = arith.constant 0 : i32
    %c0_i32_1 = arith.constant 0 : i32
    return %arg0, %c0_i32, %c0_i32_0 : i32, i32, i32
  }
  func.func @transform_1(%arg0: i32) -> (i32, i32, i32) {
    %c0_i32 = arith.constant 0 : i32
    %c0_i32_0 = arith.constant 0 : i32
    %c0_i32_1 = arith.constant 0 : i32
    return %arg0, %c0_i32, %c0_i32_0 : i32, i32, i32
  }
  func.func @transform_2(%arg0: i32) -> (i32, i32) {
    %c0_i32 = arith.constant 0 : i32
    %c0_i32_0 = arith.constant 0 : i32
    %c0_i32_1 = arith.constant 0 : i32
    return %c0_i32, %c0_i32_0 : i32, i32
  }
  func.func @transform_3(%arg0: i32) -> (i32, i32) {
    %c0_i32 = arith.constant 0 : i32
    %c0_i32_0 = arith.constant 0 : i32
    %c0_i32_1 = arith.constant 0 : i32
    return %c0_i32, %c0_i32_0 : i32, i32
  }
  func.func @transform_4(%arg0: i32) -> (i32, i32) {
    %c0_i32 = arith.constant 0 : i32
    %c0_i32_0 = arith.constant 0 : i32
    %c0_i32_1 = arith.constant 0 : i32
    return %c0_i32, %c0_i32_0 : i32, i32
  }
  func.func @transform_5(%arg0: i32) -> (i32, i32) {
    %c0_i32 = arith.constant 0 : i32
    %c0_i32_0 = arith.constant 0 : i32
    %c0_i32_1 = arith.constant 0 : i32
    return %c0_i32, %c0_i32_0 : i32, i32
  }
  func.func @transform_6(%arg0: i32) -> (i32, i32) {
    %c0_i32 = arith.constant 0 : i32
    %c0_i32_0 = arith.constant 0 : i32
    %c0_i32_1 = arith.constant 0 : i32
    return %c0_i32, %c0_i32_0 : i32, i32
  }
  func.func @transform_7(%arg0: i32) -> (i32, i32) {
    %c0_i32 = arith.constant 0 : i32
    %c0_i32_0 = arith.constant 0 : i32
    %c0_i32_1 = arith.constant 0 : i32
    return %c0_i32, %c0_i32_0 : i32, i32
  }
  func.func @transform_8(%arg0: i32) -> (i32, i32) {
    %c0_i32 = arith.constant 0 : i32
    %c0_i32_0 = arith.constant 0 : i32
    %c0_i32_1 = arith.constant 0 : i32
    return %c0_i32, %c0_i32_0 : i32, i32
  }
  func.func @transform_9(%arg0: i32) -> (i32, i32) {
    %c0_i32 = arith.constant 0 : i32
    %c0_i32_0 = arith.constant 0 : i32
    %c0_i32_1 = arith.constant 0 : i32
    return %c0_i32, %c0_i32_0 : i32, i32
  }
  func.func @transform_10(%arg0: i32) -> (i32, i32) {
    %c0_i32 = arith.constant 0 : i32
    %c0_i32_0 = arith.constant 0 : i32
    %c0_i32_1 = arith.constant 0 : i32
    return %c0_i32, %c0_i32_0 : i32, i32
  }
  func.func @transform_11(%arg0: i32) -> (i32, i32) {
    %c0_i32 = arith.constant 0 : i32
    %c0_i32_0 = arith.constant 0 : i32
    %c0_i32_1 = arith.constant 0 : i32
    return %c0_i32, %c0_i32_0 : i32, i32
  }
  func.func @transform_12(%arg0: i32) -> (i32, i32) {
    %c0_i32 = arith.constant 0 : i32
    %c0_i32_0 = arith.constant 0 : i32
    %c0_i32_1 = arith.constant 0 : i32
    return %c0_i32, %c0_i32_0 : i32, i32
  }
  func.func @transform_13(%arg0: i32) -> (i32, i32) {
    %c0_i32 = arith.constant 0 : i32
    %c0_i32_0 = arith.constant 0 : i32
    %c0_i32_1 = arith.constant 0 : i32
    return %c0_i32, %c0_i32_0 : i32, i32
  }
  func.func @transform_14(%arg0: i32) -> (i32, i32) {
    %c0_i32 = arith.constant 0 : i32
    %c0_i32_0 = arith.constant 0 : i32
    %c0_i32_1 = arith.constant 0 : i32
    return %c0_i32, %c0_i32_0 : i32, i32
  }
  func.func @transform_15(%arg0: i32) -> (i32, i32) {
    %c0_i32 = arith.constant 0 : i32
    %c0_i32_0 = arith.constant 0 : i32
    %c0_i32_1 = arith.constant 0 : i32
    return %c0_i32, %c0_i32_0 : i32, i32
  }
  func.func @transform_16(%arg0: i32) -> (i32, i32) {
    %c0_i32 = arith.constant 0 : i32
    %c0_i32_0 = arith.constant 0 : i32
    %c0_i32_1 = arith.constant 0 : i32
    return %c0_i32, %c0_i32_0 : i32, i32
  }
  func.func @transform_17(%arg0: i32) -> (i32, i32) {
    %c0_i32 = arith.constant 0 : i32
    %c0_i32_0 = arith.constant 0 : i32
    %c0_i32_1 = arith.constant 0 : i32
    return %c0_i32, %c0_i32_0 : i32, i32
  }
  func.func @transform_18(%arg0: i32) -> (i32, i32) {
    %c0_i32 = arith.constant 0 : i32
    %c0_i32_0 = arith.constant 0 : i32
    %c0_i32_1 = arith.constant 0 : i32
    return %c0_i32, %c0_i32_0 : i32, i32
  }
  func.func @transform_19(%arg0: i32) -> (i32, i32) {
    %c0_i32 = arith.constant 0 : i32
    %c0_i32_0 = arith.constant 0 : i32
    %c0_i32_1 = arith.constant 0 : i32
    return %c0_i32, %c0_i32_0 : i32, i32
  }
  func.func @transform_20(%arg0: i32) -> (i32, i32) {
    %c0_i32 = arith.constant 0 : i32
    %c0_i32_0 = arith.constant 0 : i32
    %c0_i32_1 = arith.constant 0 : i32
    return %c0_i32, %c0_i32_0 : i32, i32
  }
  func.func @transform_21(%arg0: i32) -> (i32, i32, i32) {
    %c0_i32 = arith.constant 0 : i32
    %c0_i32_0 = arith.constant 0 : i32
    %c0_i32_1 = arith.constant 0 : i32
    %c0_i32_2 = arith.constant 0 : i32
    return %c0_i32, %c0_i32_0, %c0_i32_1 : i32, i32, i32
  }
  func.func @transform_22(%arg0: i32) -> (i32, i32) {
    %c0_i32 = arith.constant 0 : i32
    %c0_i32_0 = arith.constant 0 : i32
    %c0_i32_1 = arith.constant 0 : i32
    return %c0_i32, %c0_i32_0 : i32, i32
  }
  func.func @transform_23(%arg0: i32) -> (i32, i32) {
    %c0_i32 = arith.constant 0 : i32
    %c0_i32_0 = arith.constant 0 : i32
    %c0_i32_1 = arith.constant 0 : i32
    return %c0_i32, %c0_i32_0 : i32, i32
  }
  func.func @transform_24(%arg0: i32) -> (i32, i32) {
    %c0_i32 = arith.constant 0 : i32
    %c0_i32_0 = arith.constant 0 : i32
    %c0_i32_1 = arith.constant 0 : i32
    return %c0_i32, %c0_i32_0 : i32, i32
  }
  func.func @transform_25(%arg0: i32) -> (i32, i32) {
    %c0_i32 = arith.constant 0 : i32
    %c0_i32_0 = arith.constant 0 : i32
    %c0_i32_1 = arith.constant 0 : i32
    return %c0_i32, %c0_i32_0 : i32, i32
  }
  func.func @transform_26(%arg0: i32) -> (i32, i32) {
    %c0_i32 = arith.constant 0 : i32
    %c0_i32_0 = arith.constant 0 : i32
    %c0_i32_1 = arith.constant 0 : i32
    return %c0_i32, %c0_i32_0 : i32, i32
  }
  func.func @transform_27(%arg0: i32) -> (i32, i32) {
    %c0_i32 = arith.constant 0 : i32
    %c0_i32_0 = arith.constant 0 : i32
    %c0_i32_1 = arith.constant 0 : i32
    return %c0_i32, %c0_i32_0 : i32, i32
  }
  func.func @transform_28(%arg0: i32) -> (i32, i32) {
    %c0_i32 = arith.constant 0 : i32
    %c0_i32_0 = arith.constant 0 : i32
    %c0_i32_1 = arith.constant 0 : i32
    return %c0_i32, %c0_i32_0 : i32, i32
  }
  func.func @transform_29(%arg0: i32) -> (i32, i32, i32) {
    %c0_i32 = arith.constant 0 : i32
    %c0_i32_0 = arith.constant 0 : i32
    %c0_i32_1 = arith.constant 0 : i32
    return %arg0, %c0_i32, %c0_i32_0 : i32, i32, i32
  }
  func.func @transform_30(%arg0: i32) -> (i32, i32, i32) {
    %c0_i32 = arith.constant 0 : i32
    %c0_i32_0 = arith.constant 0 : i32
    %c0_i32_1 = arith.constant 0 : i32
    return %arg0, %c0_i32, %c0_i32_0 : i32, i32, i32
  }
  func.func @transform_31(%arg0: i32) -> (i32, i32, i32) {
    %c0_i32 = arith.constant 0 : i32
    %c0_i32_0 = arith.constant 0 : i32
    %c0_i32_1 = arith.constant 0 : i32
    return %arg0, %c0_i32, %c0_i32_0 : i32, i32, i32
  }
  func.func @transform_32(%arg0: i32) -> (i32, i32, i32) {
    %c0_i32 = arith.constant 0 : i32
    %c0_i32_0 = arith.constant 0 : i32
    %c0_i32_1 = arith.constant 0 : i32
    return %arg0, %c0_i32, %c0_i32_0 : i32, i32, i32
  }
}

</mosaic_0001>

<bundles_post_ra>
// kernel: tpu_custom_call.1
= control target key start
LH: loop header
LB: loop body
LE: loop exit
PB: predicated region body
PF: predicated region fallthrough
CT: control target
= control target key end

     0   :  { %s3819_s6 = smov 1   ;;  %s3820_s10 = smov 2   ;;  %s4583_s0 = inlined_call_operand.smem [shape: u32[33], index: -1, kind: input, shape index: {}] }
   0x1   :  { %s3885_s5 = sld [smem:[%s4583_s0]]   ;;  %s3821_s14 = smov 3  }
   0x2   :  { %s3890_s9 = sld [smem:[%s4583_s0 + %s3819_s6]]   ;;  %s3822_s18 = smov 4  }
   0x3   :  { %s3895_s13 = sld [smem:[%s4583_s0 + %s3820_s10]]   ;;  %s3823_s22 = smov 5  }
   0x4   :  { %s3900_s17 = sld [smem:[%s4583_s0 + %s3821_s14]]   ;;  %s3824_s26 = smov 6  }
   0x5   :  { %s3905_s21 = sld [smem:[%s4583_s0 + %s3822_s18]]   ;;  %s3825_s30 = smov 7  }
   0x6   :  { %s3910_s25 = sld [smem:[%s4583_s0 + %s3823_s22]]   ;;  %s3826_s4 = smov 8  }
   0x7   :  { %4623 = sst [smem:[#allocation51_spill]] %s3885_s5  ;;  %s3827_s10 = smov 9  }
   0x8   :  { %4624 = sst [smem:[#allocation52_spill]] %s3890_s9  ;;  %s3828_s15 = smov 10  }
   0x9   :  { %4625 = sst [smem:[#allocation53_spill]] %s3895_s13  ;;  %s3829_s20 = smov 11  }
   0xa   :  { %4626 = sst [smem:[#allocation54_spill]] %s3900_s17  ;;  %s3831_s1 = smov 13  }
   0xb   :  { %4627 = sst [smem:[#allocation55_spill]] %s3905_s21  ;;  %s3832_s7 = smov 14  }
   0xc   :  { %s3915_s29 = sld [smem:[%s4583_s0 + %s3824_s26]]   ;;  %s3830_s26 = smov 12  }
   0xd   :  { %s3920_s3 = sld [smem:[%s4583_s0 + %s3825_s30]]   ;;  %s3834_s22 = smov 16  }
   0xe   :  { %s3925_s8 = sld [smem:[%s4583_s0 + %s3826_s4]]   ;;  %s3835_s28 = smov 17  }
   0xf   :  { %s3930_s14 = sld [smem:[%s4583_s0 + %s3827_s10]]   ;;  %s3848_s10 = smov 30  }
  0x10   :  { %s3935_s19 = sld [smem:[%s4583_s0 + %s3828_s15]]   ;;  %s3833_s15 = smov 15  }
  0x11   :  { %s3940_s24 = sld [smem:[%s4583_s0 + %s3829_s20]]   ;;  %s3849_s16 = smov 31  }
  0x12   :  { %s3945_s30 = sld [smem:[%s4583_s0 + %s3830_s26]]   ;;  %s3850_s23 = smov 32  }
  0x13   :  { %4628 = sst [smem:[#allocation56_spill]] %s3920_s3 }
  0x14   :  { %4629 = sst [smem:[#allocation57_spill]] %s3925_s8 }
  0x15   :  { %4630 = sst [smem:[#allocation58_spill]] %s3930_s14 }
  0x16   :  { %4631 = sst [smem:[#allocation59_spill]] %s3935_s19 }
  0x17   :  { %s3950_s6 = sld [smem:[%s4583_s0 + %s3831_s1]]   ;;  %s3847_s1 = smov 29  }
  0x18   :  { %4632 = sst [smem:[#allocation60_spill]] %s3945_s30 }
  0x19   :  { %s3955_s12 = sld [smem:[%s4583_s0 + %s3832_s7]]   ;;  %s3836_s7 = smov 18  }
  0x1a   :  { %s3960_s20 = sld [smem:[%s4583_s0 + %s3833_s15]]   ;;  %s3837_s15 = smov 19  }
  0x1b   :  { %s3965_s27 = sld [smem:[%s4583_s0 + %s3834_s22]]   ;;  %s3838_s22 = smov 20  }
  0x1c   :  { %s3970_s4 = sld [smem:[%s4583_s0 + %s3835_s28]]   ;;  %s3839_s28 = smov 21  }
  0x1d   :  { %4633 = sst [smem:[#allocation61_spill]] %s3950_s6 }
  0x1e   :  { %s3975_s30 = sld [smem:[%s4583_s0 + %s3836_s7]]   ;;  %s3840_s7 = smov 22  }
  0x1f   :  { %4634 = sst [smem:[#allocation62_spill]] %s3955_s12 }
  0x20   :  { %4635 = sst [smem:[#allocation63_spill]] %s3960_s20 }
  0x21   :  { %4636 = sst [smem:[#allocation64_spill]] %s3965_s27 }
  0x22   :  { %4637 = sst [smem:[#allocation65_spill]] %s3970_s4 }
  0x23   :  { %s3980_s20 = sld [smem:[%s4583_s0 + %s3837_s15]]   ;;  %s3841_s15 = smov 23  }
  0x24   :  { %4638 = sst [smem:[#allocation66_spill]] %s3975_s30 }
  0x25   :  { %s3985_s27 = sld [smem:[%s4583_s0 + %s3838_s22]]   ;;  %s3842_s22 = smov 24  }
  0x26   :  { %s3990_s14 = sld [smem:[%s4583_s0 + %s3839_s28]]   ;;  %s3843_s28 = smov 25  }
  0x27   :  { %s3995_s17 = sld [smem:[%s4583_s0 + %s3840_s7]]   ;;  %s3844_s7 = smov 26  }
  0x28   :  { %s4000_s5 = sld [smem:[%s4583_s0 + %s3841_s15]]   ;;  %s3845_s15 = smov 27  }
  0x29   :  { %4639 = sst [smem:[#allocation67_spill]] %s3980_s20 }
  0x2a   :  { %s4005_s9 = sld [smem:[%s4583_s0 + %s3842_s22]]   ;;  %s3846_s22 = smov 28  }
  0x2b   :  { %4640 = sst [smem:[#allocation68_spill]] %s3985_s27 }
  0x2c   :  { %4641 = sst [smem:[#allocation69_spill]] %s3990_s14 }
  0x2d   :  { %4642 = sst [smem:[#allocation70_spill]] %s3995_s17 }
  0x2e   :  { %4643 = sst [smem:[#allocation71_spill]] %s4000_s5 }
  0x2f   :  { %s4010_s14 = sld [smem:[%s4583_s0 + %s3843_s28]]  }
  0x30   :  { %4644 = sst [smem:[#allocation72_spill]] %s4005_s9 }
  0x31   :  { %s4015_s27 = sld [smem:[%s4583_s0 + %s3844_s7]]  }
  0x32   :  { %s4020_s5 = sld [smem:[%s4583_s0 + %s3845_s15]]  }
  0x33   :  { %s2574_s9 = sld [smem:[%s4583_s0 + %s3846_s22]]  }
  0x34   :  { %s4043_s30 = sld [smem:[%s4583_s0 + %s3850_s23]]  }
  0x35   :  { %4645 = sst [smem:[#allocation73_spill]] %s4010_s14 }
  0x36   :  { %s4028_s14 = sld [smem:[%s4583_s0 + %s3847_s1]]  }
  0x37   :  { %4646 = sst [smem:[#allocation74_spill]] %s4015_s27 }
  0x38   :  { %4647 = sst [smem:[#allocation75_spill]] %s4020_s5 }
  0x39   :  { %s4033_s27 = sld [smem:[%s4583_s0 + %s3848_s10]]   ;;  %v71_v0 = vstv %s2574_s9 }
  0x3a   :  { %s4038_s5 = sld [smem:[%s4583_s0 + %s3849_s16]]   ;;  %72 = vst [vmem:[#allocation2] sm:$0x1] %v71_v0 }
  0x3b   :  { %4650 = sst [smem:[#allocation78_spill]] %s4043_s30 }
  0x3c   :  { %4648 = sst [smem:[#allocation76_spill]] %s4028_s14 }
  0x40   :  { %4649 = sst [smem:[#allocation77_spill]] %s4038_s5 }
  0x41   :  { %73 = vsyncpa [#allocation4], 0 }
  0x42   :  { %75 = vsyncpa [#allocation4 + $0x1], 0 }
  0x43   :  { %76 = vsyncpa [#allocation7], 0 }
  0x44   :  { %77 = vsyncpa [#allocation10], 0 }
  0x45   :  { %78 = vsyncpa [#allocation13], 0 }
  0x46   :  { %79 = vsyncpa [#allocation16], 0 }
  0x47   :  { %80 = vsyncpa [#allocation19], 0 }
  0x48   :  { %81 = vsyncpa [#allocation22], 0 }
  0x49   :  { %82 = vsyncpa [#allocation25], 0 }
  0x4a   :  { %83 = vsyncpa [#allocation28], 0 }
  0x4b   :  { %84 = vsyncpa [#allocation31], 0 }
  0x4c   :  { %85 = vsyncpa [#allocation5], 0 }
  0x4d   :  { %87 = vsyncpa [#allocation5 + $0x1], 0 }
  0x4e   :  { %88 = vsyncpa [#allocation34], 0 }
  0x4f   :  { %90 = vsyncpa [#allocation34 + $0x1], 0 }
  0x50   :  { %91 = vsyncpa [#allocation37], 0 }
  0x51   :  { %93 = vsyncpa [#allocation37 + $0x1], 0  ;;  %s4045_s0 = smov 0   ;;  %s4047_s9 = smov 0  }
  0x52   :  { %s4049_s1 = smov 0   ;;  %s4051_s28 = smov 0  }
  0x53 LB: > { %s4651_s21 = sld [smem:[#allocation55_spill]]  ;;  %s4069_s10 = sadd.s32 4294967295, %s3817_s28   ;;  %s3809_s9 = sphi %s4047_s9, %s4714_s9   ;;  %s3805_s0 = sphi %s4045_s0, %s4713_s0   ;;  %s3817_s28 = sphi %s4051_s28, %s4716_s28   ;;  %s3813_s1 = sphi %s4049_s1, %s4715_s1  }
  0x54   : > { %s4652_s20 = sld [smem:[#allocation67_spill]]  ;;  %p2581_p0 = scmp.ge.s32.totalorder %s3817_s28, 1 }
  0x55   : > { %s4653_s19 = sld [smem:[#allocation59_spill]]  ;;  %p4612_p1 = scmp.eq.s32.totalorder %s4069_s10, 0 }
  0x56   : > { %s4654_s17 = sld [smem:[#allocation70_spill]]  ;;  %p827_p2 = scmp.lt.s32.totalorder %s3817_s28, 3 }
  0x57   : > { %s4655_s12 = sld [smem:[#allocation62_spill]]  ;;  %s3851_s11 = smov [#allocation6]  }
  0x58   : > { %s4656_s8 = sld [smem:[#allocation57_spill]]  ;;  %p4074_p3 = pnand %p2581_p0, %p827_p2 }
  0x59   : > { %s4657_s6 = sld [smem:[#allocation61_spill]]  ;;  %s841_s16 = sshll.u32 %s3851_s11, 4  ;;  %s842_s16 = int_to_ptr.vmem [resolvable:$true] %s841_s16 }
  0x5a   : > { %s4658_s4 = sld [smem:[#allocation65_spill]]  ;;  %p2850_p5 = pneg %p4074_p3 }
  0x5b   : > { %s4659_s3 = sld [smem:[#allocation56_spill]]  ;;  %s866_s15 = sshll.u32 %s3910_s25, 4  ;;  %s4082_s15 = int_to_ptr.hbm [resolvable:$true] %s866_s15 }
  0x5c   : > { %s4660_s13 = sld [smem:[#allocation53_spill]]  ;;  %p4086_p6 = pnand %p2850_p5, %p4612_p1 }
  0x5d   : > { %s3852_s23 = smov [#allocation9]  }
  0x5e   : > { %s4090_s22 = sshll.u32 %s3852_s23, 4  ;;  %p4099_p8 = pneg %p4086_p6 }
  0x5f   : > { %4663 = sst [smem:[#allocation79_spill]] %s4090_s22 }
  0x61   : > { %s892_s26 = sshll.u32 %s4659_s3, 4  ;;  %s4094_s26 = int_to_ptr.hbm [resolvable:$true] %s892_s26 }
  0x62   : > { %s839_s2 = sshll.u32 %s4660_s13, 4  ;;  %s3090_s23 = scalar_lea.hbm %s4660_s13, 2  ;;  %s4066_s2 = int_to_ptr.hbm [resolvable:$true] %s839_s2 }
  0x63   : > { %s3083_s11 = sshra.s32 %s4066_s2, 4  ;;  %s3084_s11 = int_to_ptr.hbm [resolvable:$true] %s3083_s11 }
  0x64   : > { %s3085_s30 = scalar_lea.hbm %s3084_s11, 2  ;;  %p3091_p11 = scmp.lt.s32.totalorder %s3084_s11, %s4660_s13 }
  0x65   : > { %p3086_p7 = scmp.ne.s32.totalorder %s3084_s11, %s3085_s30  ;;  %p3092_p12 = scmp.lt.s32.totalorder %s3090_s23, %s3085_s30 }
  0x67   : > { %p3088_p9 = pnand %p4099_p8, %p3086_p7  ;;  %p3093_p13 = por %p3092_p12, %p3091_p11 }
  0x69   : > { %p3089_p10 = pneg %p3088_p9 }
  0x6b   : > { %p3094_p0 = pnand %p3093_p13, %p3089_p10 }
  0x6d   : > { %3097 = shalt.err (!%p3094_p0)
}
  0x6e   : > { %2853 = dma.hbm_to_vmem [thread:$0]  (!%p4086_p6), %s4066_s2, 32, %s842_s16, [#allocation7]  }
  0x6f   : > { %s3113_s22 = sshra.s32 %s4082_s15, 4  ;;  %s3120_s11 = scalar_lea.hbm %s3910_s25, 2  ;;  %s3114_s22 = int_to_ptr.hbm [resolvable:$true] %s3113_s22 }
  0x70   : > { %s3115_s14 = scalar_lea.hbm %s3114_s22, 2  ;;  %p3121_p9 = scmp.lt.s32.totalorder %s3114_s22, %s3910_s25 }
  0x71   : > { %p3116_p2 = scmp.ne.s32.totalorder %s3114_s22, %s3115_s14  ;;  %p3122_p11 = scmp.lt.s32.totalorder %s3120_s11, %s3115_s14 }
  0x73   : > { %p3118_p5 = pnand %p3116_p2, %p4099_p8  ;;  %p3123_p10 = por %p3122_p11, %p3121_p9 }
  0x75   : > { %p3119_p7 = pneg %p3118_p5 }
  0x77   : > { %p3124_p12 = pnand %p3123_p10, %p3119_p7 }
  0x79   : > { %3127 = shalt.err (!%p3124_p12)
}
  0x7a   : > { %s4665_s30 = sld [smem:[#allocation79_spill]]  ;;  %s919_s2 = sshll.u32 %s4653_s19, 4  ;;  %s4121_s2 = int_to_ptr.hbm [resolvable:$true] %s919_s2 }
  0x7b   : > { %s3853_s16 = smov [#allocation12]   ;;  %s3143_s14 = sshra.s32 %s4094_s26, 4  ;;  %s3144_s14 = int_to_ptr.hbm [resolvable:$true] %s3143_s14 }
  0x7c   : > { %s894_s13 = sshll.u32 %s3853_s16, 4  ;;  %s3145_s22 = scalar_lea.hbm %s3144_s14, 1  ;;  %s895_s13 = int_to_ptr.vmem [resolvable:$true] %s894_s13 }
  0x7d   : > { %p3146_p13 = scmp.ne.s32.totalorder %s3144_s14, %s3145_s22  ;;  %s3150_s11 = scalar_lea.hbm %s4659_s3, 1 }
  0x7e   : > { %p3151_p5 = scmp.lt.s32.totalorder %s3144_s14, %s4659_s3  ;;  %p3152_p7 = scmp.lt.s32.totalorder %s3150_s11, %s3145_s22 }
  0x7f   : > { %p3148_p0 = pnand %p3146_p13, %p4099_p8 }
  0x80   : > { %s4666_s23 = int_to_ptr.vmem [resolvable:$true] %s4665_s30  ;;  %p3153_p9 = por %p3152_p7, %p3151_p5 }
  0x81   : > { %2859 = dma.hbm_to_vmem [thread:$0]  (!%p4086_p6), %s4082_s15, 32, %s4666_s23, [#allocation10]  }
  0x82   : > { %p3149_p2 = pneg %p3148_p0 }
  0x84   : > { %p3154_p11 = pnand %p3153_p9, %p3149_p2 }
  0x86   : > { %3157 = shalt.err (!%p3154_p11)
}
  0x87   : > { %2865 = dma.hbm_to_vmem [thread:$0]  (!%p4086_p6), %s4094_s26, 16, %s895_s13, [#allocation13]  }
  0x88   : > { %s3854_s15 = smov [#allocation15]   ;;  %s946_s23 = sshll.u32 %s4657_s6, 4  ;;  %s4132_s23 = int_to_ptr.hbm [resolvable:$true] %s946_s23 }
  0x89   : > { %s921_s30 = sshll.u32 %s3854_s15, 4  ;;  %s3173_s16 = sshra.s32 %s4121_s2, 4  ;;  %s922_s30 = int_to_ptr.vmem [resolvable:$true] %s921_s30  ;;  %s3174_s16 = int_to_ptr.hbm [resolvable:$true] %s3173_s16 }
  0x8a   : > { %s3175_s14 = scalar_lea.hbm %s3174_s16, 1  ;;  %s3180_s22 = scalar_lea.hbm %s4653_s19, 1 }
  0x8b   : > { %p3176_p10 = scmp.ne.s32.totalorder %s3174_s16, %s3175_s14  ;;  %p3181_p0 = scmp.lt.s32.totalorder %s3174_s16, %s4653_s19 }
  0x8c   : > { %p3182_p2 = scmp.lt.s32.totalorder %s3180_s22, %s3175_s14 }
  0x8d   : > { %p3178_p12 = pnand %p3176_p10, %p4099_p8 }
  0x8e   : > { %p3183_p5 = por %p3182_p2, %p3181_p0 }
  0x8f   : > { %p3179_p13 = pneg %p3178_p12 }
  0x91   : > { %p3184_p7 = pnand %p3183_p5, %p3179_p13 }
  0x93   : > { %3187 = shalt.err (!%p3184_p7)
}
  0x94   : > { %2871 = dma.hbm_to_vmem [thread:$0]  (!%p4086_p6), %s4121_s2, 16, %s922_s30, [#allocation16]  }
  0x95   : > { %s976_s13 = sshll.u32 %s4658_s4, 4  ;;  %s3855_s26 = smov [#allocation18]   ;;  %s4143_s13 = int_to_ptr.hbm [resolvable:$true] %s976_s13 }
  0x96   : > { %s948_s11 = sshll.u32 %s3855_s26, 4  ;;  %s3203_s15 = sshra.s32 %s4132_s23, 4  ;;  %s949_s11 = int_to_ptr.vmem [resolvable:$true] %s948_s11  ;;  %s3204_s15 = int_to_ptr.hbm [resolvable:$true] %s3203_s15 }
  0x97   : > { %s3205_s16 = scalar_lea.hbm %s3204_s15, 1  ;;  %s3210_s14 = scalar_lea.hbm %s4657_s6, 1 }
  0x98   : > { %p3206_p9 = scmp.ne.s32.totalorder %s3204_s15, %s3205_s16  ;;  %p3211_p12 = scmp.lt.s32.totalorder %s3204_s15, %s4657_s6 }
  0x99   : > { %p3212_p13 = scmp.lt.s32.totalorder %s3210_s14, %s3205_s16 }
  0x9a   : > { %p3208_p11 = pnand %p3206_p9, %p4099_p8 }
  0x9b   : > { %p3213_p0 = por %p3212_p13, %p3211_p12 }
  0x9c   : > { %p3209_p10 = pneg %p3208_p11 }
  0x9e   : > { %p3214_p2 = pnand %p3213_p0, %p3209_p10 }
  0xa0   : > { %3217 = shalt.err (!%p3214_p2)
}
  0xa1   : > { %2877 = dma.hbm_to_vmem [thread:$0]  (!%p4086_p6), %s4132_s23, 16, %s949_s11, [#allocation19]  }
  0xa2   : > { %s3856_s2 = smov [#allocation21]   ;;  %s1002_s22 = sshll.u32 %s4652_s20, 4  ;;  %s4154_s22 = int_to_ptr.hbm [resolvable:$true] %s1002_s22 }
  0xa3   : > { %s978_s30 = sshll.u32 %s3856_s2, 4  ;;  %s3233_s26 = sshra.s32 %s4143_s13, 4  ;;  %s979_s30 = int_to_ptr.vmem [resolvable:$true] %s978_s30  ;;  %s3234_s26 = int_to_ptr.hbm [resolvable:$true] %s3233_s26 }
  0xa4   : > { %s3235_s15 = scalar_lea.hbm %s3234_s26, 2  ;;  %s3240_s16 = scalar_lea.hbm %s4658_s4, 2 }
  0xa5   : > { %p3236_p5 = scmp.ne.s32.totalorder %s3234_s26, %s3235_s15  ;;  %p3241_p11 = scmp.lt.s32.totalorder %s3234_s26, %s4658_s4 }
  0xa6   : > { %p3242_p10 = scmp.lt.s32.totalorder %s3240_s16, %s3235_s15 }
  0xa7   : > { %p3238_p7 = pnand %p3236_p5, %p4099_p8 }
  0xa8   : > { %p3243_p12 = por %p3242_p10, %p3241_p11 }
  0xa9   : > { %p3239_p9 = pneg %p3238_p7 }
  0xab   : > { %p3244_p13 = pnand %p3243_p12, %p3239_p9 }
  0xad   : > { %3247 = shalt.err (!%p3244_p13)
}
  0xae   : > { %2883 = dma.hbm_to_vmem [thread:$0]  (!%p4086_p6), %s4143_s13, 32, %s979_s30, [#allocation22]  }
  0xaf   : > { %s1029_s23 = sshll.u32 %s4654_s17, 4  ;;  %s3857_s11 = smov [#allocation24]   ;;  %s4165_s23 = int_to_ptr.hbm [resolvable:$true] %s1029_s23 }
  0xb0   : > { %s1004_s14 = sshll.u32 %s3857_s11, 4  ;;  %s3263_s2 = sshra.s32 %s4154_s22, 4  ;;  %s1005_s14 = int_to_ptr.vmem [resolvable:$true] %s1004_s14  ;;  %s3264_s2 = int_to_ptr.hbm [resolvable:$true] %s3263_s2 }
  0xb1   : > { %s3265_s26 = scalar_lea.hbm %s3264_s2, 1  ;;  %s3270_s15 = scalar_lea.hbm %s4652_s20, 1 }
  0xb2   : > { %p3266_p0 = scmp.ne.s32.totalorder %s3264_s2, %s3265_s26  ;;  %p3271_p7 = scmp.lt.s32.totalorder %s3264_s2, %s4652_s20 }
  0xb3   : > { %p3272_p9 = scmp.lt.s32.totalorder %s3270_s15, %s3265_s26 }
  0xb4   : > { %p3268_p2 = pnand %p3266_p0, %p4099_p8 }
  0xb5   : > { %p3273_p11 = por %p3272_p9, %p3271_p7 }
  0xb6   : > { %p3269_p5 = pneg %p3268_p2 }
  0xb8   : > { %p3274_p10 = pnand %p3273_p11, %p3269_p5 }
  0xba   : > { %3277 = shalt.err (!%p3274_p10)
}
  0xbb   : > { %2889 = dma.hbm_to_vmem [thread:$0]  (!%p4086_p6), %s4154_s22, 16, %s1005_s14, [#allocation25]  }
  0xbc   : > { %s3858_s13 = smov [#allocation27]   ;;  %s854_s16 = sshll.u32 %s4651_s21, 4  ;;  %s4176_s16 = int_to_ptr.hbm [resolvable:$true] %s854_s16 }
  0xbd   : > { %s1031_s30 = sshll.u32 %s3858_s13, 4  ;;  %s3293_s11 = sshra.s32 %s4165_s23, 4  ;;  %s1032_s30 = int_to_ptr.vmem [resolvable:$true] %s1031_s30  ;;  %s3294_s11 = int_to_ptr.hbm [resolvable:$true] %s3293_s11 }
  0xbe   : > { %s3295_s2 = scalar_lea.hbm %s3294_s11, 1  ;;  %s3300_s26 = scalar_lea.hbm %s4654_s17, 1 }
  0xbf   : > { %p3296_p12 = scmp.ne.s32.totalorder %s3294_s11, %s3295_s2  ;;  %p3301_p2 = scmp.lt.s32.totalorder %s3294_s11, %s4654_s17 }
  0xc0   : > { %p3302_p5 = scmp.lt.s32.totalorder %s3300_s26, %s3295_s2 }
  0xc1   : > { %p3298_p13 = pnand %p3296_p12, %p4099_p8 }
  0xc2   : > { %p3303_p7 = por %p3302_p5, %p3301_p2 }
  0xc3   : > { %p3299_p0 = pneg %p3298_p13 }
  0xc5   : > { %p3304_p9 = pnand %p3303_p7, %p3299_p0 }
  0xc7   : > { %3307 = shalt.err (!%p3304_p9)
}
  0xc8   : > { %2895 = dma.hbm_to_vmem [thread:$0]  (!%p4086_p6), %s4165_s23, 16, %s1032_s30, [#allocation28]  }
  0xc9   : > { %s877_s22 = sshll.u32 %s3915_s29, 4  ;;  %s3859_s14 = smov [#allocation8]   ;;  %s4187_s22 = int_to_ptr.hbm [resolvable:$true] %s877_s22 }
  0xca   : > { %s856_s15 = sshll.u32 %s3859_s14, 4  ;;  %s3323_s13 = sshra.s32 %s4176_s16, 4  ;;  %s857_s15 = int_to_ptr.vmem [resolvable:$true] %s856_s15  ;;  %s3324_s13 = int_to_ptr.hbm [resolvable:$true] %s3323_s13 }
  0xcb   : > { %s3325_s11 = scalar_lea.hbm %s3324_s13, 1  ;;  %s3330_s2 = scalar_lea.hbm %s4651_s21, 1 }
  0xcc   : > { %p3326_p11 = scmp.ne.s32.totalorder %s3324_s13, %s3325_s11  ;;  %p3331_p13 = scmp.lt.s32.totalorder %s3324_s13, %s4651_s21 }
  0xcd   : > { %p3332_p0 = scmp.lt.s32.totalorder %s3330_s2, %s3325_s11 }
  0xce   : > { %p3328_p10 = pnand %p3326_p11, %p4099_p8 }
  0xcf   : > { %p3333_p2 = por %p3332_p0, %p3331_p13 }
  0xd0   : > { %p3329_p12 = pneg %p3328_p10 }
  0xd2   : > { %p3334_p5 = pnand %p3333_p2, %p3329_p12 }
  0xd4   : > { %3337 = shalt.err (!%p3334_p5)
}
  0xd5   : > { %2856 = dma.hbm_to_vmem [thread:$0]  (!%p4086_p6), %s4176_s16, 16, %s857_s15, [#allocation7]  }
  0xd6   : > { %s3860_s23 = smov [#allocation11]   ;;  %s3353_s26 = sshra.s32 %s4187_s22, 4  ;;  %s3354_s26 = int_to_ptr.hbm [resolvable:$true] %s3353_s26 }
  0xd7   : > { %s879_s30 = sshll.u32 %s3860_s23, 4  ;;  %s3355_s14 = scalar_lea.hbm %s3354_s26, 16  ;;  %s880_s30 = int_to_ptr.vmem [resolvable:$true] %s879_s30 }
  0xd8   : > { %p3356_p7 = scmp.ne.s32.totalorder %s3354_s26, %s3355_s14  ;;  %s3360_s13 = scalar_lea.hbm %s3915_s29, 16 }
  0xd9   : > { %p3361_p10 = scmp.lt.s32.totalorder %s3354_s26, %s3915_s29  ;;  %p3362_p12 = scmp.lt.s32.totalorder %s3360_s13, %s3355_s14 }
  0xda   : > { %p3358_p9 = pnand %p3356_p7, %p4099_p8 }
  0xdb   : > { %p3363_p13 = por %p3362_p12, %p3361_p10 }
  0xdc   : > { %p3359_p11 = pneg %p3358_p9 }
  0xde   : > { %p3364_p0 = pnand %p3363_p13, %p3359_p11 }
  0xe0   : > { %3367 = shalt.err (!%p3364_p0)
}
  0xe1   : > { %s4601_s11 = smov 64   ;;  %s4602_s16 = smov 4  }
  0xe2   : > { %2862 = dma.hbm_to_vmem [thread:$0]  (!%p4086_p6), %s4187_s22, 256, %s880_s30, [#allocation10], %s4601_s11, %s4601_s11, %s4602_s16  }
  0xe3   : > { %s904_s15 = sshll.u32 %s4656_s8, 4  ;;  %s3863_s2 = smov [#allocation14]   ;;  %s905_s15 = int_to_ptr.hbm [resolvable:$true] %s904_s15 }
  0xe4   : > { %s906_s23 = sshll.u32 %s3863_s2, 4  ;;  %s931_s26 = sshll.u32 %s3940_s24, 4  ;;  %s907_s23 = int_to_ptr.vmem [resolvable:$true] %s906_s23  ;;  %s932_s26 = int_to_ptr.hbm [resolvable:$true] %s931_s26 }
  0xe5   : > { %s3383_s14 = sshra.s32 %s905_s15, 4  ;;  %s3390_s3 = scalar_lea.hbm %s4656_s8, 2  ;;  %s3384_s14 = int_to_ptr.hbm [resolvable:$true] %s3383_s14 }
  0xe6   : > { %s3385_s13 = scalar_lea.hbm %s3384_s14, 2  ;;  %p3391_p9 = scmp.lt.s32.totalorder %s3384_s14, %s4656_s8 }
  0xe7   : > { %p3386_p2 = scmp.ne.s32.totalorder %s3384_s14, %s3385_s13  ;;  %p3392_p11 = scmp.lt.s32.totalorder %s3390_s3, %s3385_s13 }
  0xe9   : > { %p3388_p5 = pnand %p3386_p2, %p4099_p8  ;;  %p3393_p10 = por %p3392_p11, %p3391_p9 }
  0xeb   : > { %p3389_p7 = pneg %p3388_p5 }
  0xed   : > { %p3394_p12 = pnand %p3393_p10, %p3389_p7 }
  0xef   : > { %3397 = shalt.err (!%p3394_p12)
}
  0xf0   : > { %2868 = dma.hbm_to_vmem [thread:$0]  (!%p4086_p6), %s905_s15, 32, %s907_s23, [#allocation13]  }
  0xf1   : > { %s3864_s22 = smov [#allocation17]   ;;  %s958_s2 = sshll.u32 %s4655_s12, 4  ;;  %s4217_s2 = int_to_ptr.hbm [resolvable:$true] %s958_s2 }
  0xf2   : > { %s933_s30 = sshll.u32 %s3864_s22, 4  ;;  %s3413_s11 = sshra.s32 %s932_s26, 4  ;;  %s934_s30 = int_to_ptr.vmem [resolvable:$true] %s933_s30  ;;  %s3414_s11 = int_to_ptr.hbm [resolvable:$true] %s3413_s11 }
  0xf3   : > { %s3415_s3 = scalar_lea.hbm %s3414_s11, 2  ;;  %s3420_s14 = scalar_lea.hbm %s3940_s24, 2 }
  0xf4   : > { %p3416_p13 = scmp.ne.s32.totalorder %s3414_s11, %s3415_s3  ;;  %p3421_p5 = scmp.lt.s32.totalorder %s3414_s11, %s3940_s24 }
  0xf5   : > { %p3422_p7 = scmp.lt.s32.totalorder %s3420_s14, %s3415_s3 }
  0xf6   : > { %p3418_p0 = pnand %p3416_p13, %p4099_p8 }
  0xf7   : > { %p3423_p9 = por %p3422_p7, %p3421_p5 }
  0xf8   : > { %p3419_p2 = pneg %p3418_p0 }
  0xfa   : > { %p3424_p11 = pnand %p3423_p9, %p3419_p2 }
  0xfc   : > { %3427 = shalt.err (!%p3424_p11)
}
  0xfd   : > { %s4667_s15 = sld [smem:[#allocation66_spill]]  ;;  %s3865_s13 = smov [#allocation20]  }
  0xfe   : > { %2874 = dma.hbm_to_vmem [thread:$0]  (!%p4086_p6), %s932_s26, 32, %s934_s30, [#allocation16]  }
  0xff   : > { %s960_s22 = sshll.u32 %s3865_s13, 4  ;;  %s3443_s16 = sshra.s32 %s4217_s2, 4  ;;  %s961_s22 = int_to_ptr.vmem [resolvable:$true] %s960_s22  ;;  %s3444_s16 = int_to_ptr.hbm [resolvable:$true] %s3443_s16 }
 0x100   : > { %s3445_s11 = scalar_lea.hbm %s3444_s16, 2  ;;  %s3450_s3 = scalar_lea.hbm %s4655_s12, 2 }
 0x101   : > { %p3446_p10 = scmp.ne.s32.totalorder %s3444_s16, %s3445_s11  ;;  %p3451_p0 = scmp.lt.s32.totalorder %s3444_s16, %s4655_s12 }
 0x102   : > { %p3452_p2 = scmp.lt.s32.totalorder %s3450_s3, %s3445_s11 }
 0x103   : > { %s987_s23 = sshll.u32 %s4667_s15, 4  ;;  %p3448_p12 = pnand %p3446_p10, %p4099_p8  ;;  %s4226_s23 = int_to_ptr.hbm [resolvable:$true] %s987_s23 }
 0x104   : > { %p3453_p5 = por %p3452_p2, %p3451_p0 }
 0x105   : > { %p3449_p13 = pneg %p3448_p12 }
 0x107   : > { %p3454_p7 = pnand %p3453_p5, %p3449_p13 }
 0x109   : > { %3457 = shalt.err (!%p3454_p7)
}
 0x10a   : > { %s4668_s26 = sld [smem:[#allocation68_spill]]  ;;  %s3866_s30 = smov [#allocation23]  }
 0x10b   : > { %2880 = dma.hbm_to_vmem [thread:$0]  (!%p4086_p6), %s4217_s2, 32, %s961_s22, [#allocation19]  }
 0x10c   : > { %s989_s14 = sshll.u32 %s3866_s30, 4  ;;  %s3473_s16 = sshra.s32 %s4226_s23, 4  ;;  %s990_s14 = int_to_ptr.vmem [resolvable:$true] %s989_s14  ;;  %s3474_s16 = int_to_ptr.hbm [resolvable:$true] %s3473_s16 }
 0x10d   : > { %s3475_s11 = scalar_lea.hbm %s3474_s16, 16  ;;  %s3480_s3 = scalar_lea.hbm %s4667_s15, 16 }
 0x10e   : > { %p3476_p9 = scmp.ne.s32.totalorder %s3474_s16, %s3475_s11  ;;  %p3481_p12 = scmp.lt.s32.totalorder %s3474_s16, %s4667_s15 }
 0x10f   : > { %p3482_p13 = scmp.lt.s32.totalorder %s3480_s3, %s3475_s11 }
 0x110   : > { %s1014_s13 = sshll.u32 %s4668_s26, 4  ;;  %p3478_p11 = pnand %p3476_p9, %p4099_p8  ;;  %s4237_s13 = int_to_ptr.hbm [resolvable:$true] %s1014_s13 }
 0x111   : > { %p3483_p0 = por %p3482_p13, %p3481_p12 }
 0x112   : > { %p3479_p10 = pneg %p3478_p11 }
 0x114   : > { %p3484_p2 = pnand %p3483_p0, %p3479_p10 }
 0x116   : > { %3487 = shalt.err (!%p3484_p2)
}
 0x117   : > { %s4669_s2 = smov 4   ;;  %s4670_s22 = smov 64  }
 0x118   : > { %s4671_s30 = sld [smem:[#allocation72_spill]]  ;;  %s3867_s6 = smov [#allocation26]  }
 0x119   : > { %2886 = dma.hbm_to_vmem [thread:$0]  (!%p4086_p6), %s4226_s23, 256, %s990_s14, [#allocation22], %s4670_s22, %s4670_s22, %s4669_s2  }
 0x11a   : > { %s1016_s8 = sshll.u32 %s3867_s6, 4  ;;  %s3503_s16 = sshra.s32 %s4237_s13, 4  ;;  %s1017_s8 = int_to_ptr.vmem [resolvable:$true] %s1016_s8  ;;  %s3504_s16 = int_to_ptr.hbm [resolvable:$true] %s3503_s16 }
 0x11b   : > { %s3505_s11 = scalar_lea.hbm %s3504_s16, 2  ;;  %s3510_s3 = scalar_lea.hbm %s4668_s26, 2 }
 0x11c   : > { %p3506_p5 = scmp.ne.s32.totalorder %s3504_s16, %s3505_s11  ;;  %p3511_p11 = scmp.lt.s32.totalorder %s3504_s16, %s4668_s26 }
 0x11d   : > { %p3512_p10 = scmp.lt.s32.totalorder %s3510_s3, %s3505_s11 }
 0x11e   : > { %s1044_s4 = sshll.u32 %s4671_s30, 4  ;;  %p3508_p7 = pnand %p3506_p5, %p4099_p8  ;;  %s4251_s4 = int_to_ptr.hbm [resolvable:$true] %s1044_s4 }
 0x11f   : > { %p3513_p12 = por %p3512_p10, %p3511_p11 }
 0x120   : > { %p3509_p9 = pneg %p3508_p7 }
 0x122   : > { %p3514_p13 = pnand %p3513_p12, %p3509_p9 }
 0x124   : > { %3517 = shalt.err (!%p3514_p13)
}
 0x125   : > { %s4672_s6 = sld [smem:[#allocation75_spill]]  ;;  %s3868_s23 = smov [#allocation29]  }
 0x126   : > { %2892 = dma.hbm_to_vmem [thread:$0]  (!%p4086_p6), %s4237_s13, 32, %s1017_s8, [#allocation25]  }
 0x127   : > { %s1046_s14 = sshll.u32 %s3868_s23, 4  ;;  %s3533_s22 = sshra.s32 %s4251_s4, 4  ;;  %s1047_s14 = int_to_ptr.vmem [resolvable:$true] %s1046_s14  ;;  %s3534_s22 = int_to_ptr.hbm [resolvable:$true] %s3533_s22 }
 0x128   : > { %s3535_s16 = scalar_lea.hbm %s3534_s22, 1  ;;  %s3540_s11 = scalar_lea.hbm %s4671_s30, 1 }
 0x129   : > { %p3536_p0 = scmp.ne.s32.totalorder %s3534_s22, %s3535_s16  ;;  %p3541_p7 = scmp.lt.s32.totalorder %s3534_s22, %s4671_s30 }
 0x12a   : > { %p3542_p9 = scmp.lt.s32.totalorder %s3540_s11, %s3535_s16 }
 0x12b   : > { %s1062_s2 = sshll.u32 %s4672_s6, 4  ;;  %p3538_p2 = pnand %p3536_p0, %p4099_p8  ;;  %s4262_s2 = int_to_ptr.hbm [resolvable:$true] %s1062_s2 }
 0x12c   : > { %p3543_p11 = por %p3542_p9, %p3541_p7 }
 0x12d   : > { %p3539_p5 = pneg %p3538_p2 }
 0x12f   : > { %p3544_p10 = pnand %p3543_p11, %p3539_p5 }
 0x131   : > { %3547 = shalt.err (!%p3544_p10)
}
 0x132   : > { %2898 = dma.hbm_to_vmem [thread:$0]  (!%p4086_p6), %s4251_s4, 16, %s1047_s14, [#allocation28]  }
 0x133   : > { %s3869_s8 = smov [#allocation30]   ;;  %s3563_s3 = sshra.s32 %s4262_s2, 4  ;;  %s3564_s3 = int_to_ptr.hbm [resolvable:$true] %s3563_s3 }
 0x134   : > { %s1064_s13 = sshll.u32 %s3869_s8, 4  ;;  %s3565_s23 = scalar_lea.hbm %s3564_s3, 1  ;;  %s1065_s13 = int_to_ptr.vmem [resolvable:$true] %s1064_s13 }
 0x135   : > { %p3566_p12 = scmp.ne.s32.totalorder %s3564_s3, %s3565_s23  ;;  %s3570_s22 = scalar_lea.hbm %s4672_s6, 1 }
 0x136   : > { %p3571_p2 = scmp.lt.s32.totalorder %s3564_s3, %s4672_s6  ;;  %p3572_p5 = scmp.lt.s32.totalorder %s3570_s22, %s3565_s23 }
 0x137   : > { %p3568_p13 = pnand %p3566_p12, %p4099_p8 }
 0x138   : > { %p3573_p7 = por %p3572_p5, %p3571_p2 }
 0x139   : > { %p3569_p0 = pneg %p3568_p13 }
 0x13b   : > { %p3574_p9 = pnand %p3573_p7, %p3569_p0 }
 0x13d   : > { %3577 = shalt.err (!%p3574_p9)
}
 0x13e   : > { %2901 = dma.hbm_to_vmem [thread:$0]  (!%p4086_p6), %s4262_s2, 16, %s1065_s13, [#allocation31]  }
 0x13f   : > { %s4609_s5 = sadd.s32 4294967294, %s3817_s28   ;;  %s4282_s4 = sadd.s32 1, %s3817_s28  }
 0x140   : > { %s132_s18 = sadd.s32 1, %s3813_s1  ;;  %s129_s14 = ssub.s32 %s3817_s28, %s4282_s4 }
 0x141   : > { %s4673_s16 = sld [smem:[#allocation52_spill]]  ;;  %p139_p8 = scmp.ne.s32.totalorder %s3813_s1, %s3809_s9 }
 0x142   : > { %p130_p11 = scmp.eq.s32.totalorder %s129_s14, 0  ;;  %p140_p10 = scmp.eq.s32.totalorder %s3817_s28, 0 }
 0x143   : > { %p145_p12 = scmp.ne.s32.totalorder %s3809_s9, %s3805_s0  ;;  %p736_p13 = scmp.eq.s32.totalorder %s4069_s10, 1 }
 0x144   : > { %s4294_s11 = scalar_select %p130_p11, %s3813_s1, %s132_s18  }
 0x145   : > { %p4298_p0 = por %p4612_p1, %p145_p12  ;;  %p4302_p6 = por %p736_p13, %p139_p8 }
 0x146   : > { %p742_p2 = scmp.eq.s32.totalorder %s4609_s5, 1  ;;  %p141_p5 = por %p140_p10, %p139_p8 }
 0x147   : > { %s1086_s13 = sand.u32 1, %s3813_s1   ;;  %p2936_p9 = scmp.lt.s32.totalorder %s3817_s28, 2 }
 0x148   : > { %p4309_p7 = por %p742_p2, %p145_p12  ;;  %s2600_s23 = sshll.u32 %s1086_s13, 3 }
 0x149   : > { %s2601_s22 = sshll.u32 %s3817_s28, 3  ;;  %s1090_s6 = scalar_lea.vmem [#allocation3], %s2600_s23 }
 0x14a   : > { %s4676_s3 = scalar_select %p4309_p7, 1, 0 }
 0x14b   : > { %s1094_s18 = scalar_lea.hbm %s4673_s16, %s2601_s22  ;;  %s1098_s12 = sshll.u32 %s1090_s6, 4  ;;  %s1099_s12 = int_to_ptr.vmem [resolvable:$true] %s1098_s12 }
 0x14c   : > { %s1096_s14 = sshll.u32 %s1094_s18, 4  ;;  %p4316_p11 = pnand %p2936_p9, %p141_p5  ;;  %s1097_s14 = int_to_ptr.hbm [resolvable:$true] %s1096_s14 }
 0x14d   : > { %s1087_s5 = scalar_lea.sflag [#allocation4], %s1086_s13  ;;  %s3593_s17 = sshra.s32 %s1097_s14, 4  ;;  %s3594_s17 = int_to_ptr.hbm [resolvable:$true] %s3593_s17 }
 0x14e   : > { %s3595_s19 = scalar_lea.hbm %s3594_s17, 8  ;;  %p3597_p10 = pneg %p4316_p11 }
 0x14f   : > { %p3596_p8 = scmp.ne.s32.totalorder %s3594_s17, %s3595_s19  ;;  %s3600_s22 = scalar_lea.hbm %s4673_s16, 16 }
 0x150   : > { %p3601_p2 = scmp.lt.s32.totalorder %s3594_s17, %s4673_s16  ;;  %p3602_p4 = scmp.lt.s32.totalorder %s3600_s22, %s3595_s19 }
 0x151   : > { %p3598_p12 = pnand %p3597_p10, %p3596_p8 }
 0x152   : > { %p3603_p1 = por %p3602_p4, %p3601_p2 }
 0x153   : > { %p3599_p13 = pneg %p3598_p12 }
 0x155   : > { %p3604_p7 = pnand %p3603_p1, %p3599_p13 }
 0x157   : > { %3607 = shalt.err (!%p3604_p7)
}
 0x158   : > { %2905 = dma.hbm_to_vmem [thread:$0]  (!%p4316_p11), %s1097_s14, 128, %s1099_s12, %s1087_s5  }
 0x159   : > { %1107 = sbr.rel (%p4074_p3) target bundleno = 1932 (0x78c), region = 136  ;;  %s4329_s6 = sand.u32 (!%p4074_p3), 1, %s3809_s9  }
 0x15a   : > { %s2603_s13 = sshll.u32 (!%p4074_p3), %s4329_s6, 3  ;;  %s1110_s23 = scalar_lea.sflag (!%p4074_p3), [#allocation4], %s4329_s6 }
 0x15b   : > { %s1113_s17 = scalar_lea.vmem (!%p4074_p3), [#allocation3], %s2603_s13 }
 0x15e   : > { %3752 = dma.done.wait (%p4298_p0), %s1110_s23, 128  }
 0x15f   : > { %3754 = vsyncadd (%p4298_p0), %s1110_s23, 4294967168  ;;  %p4678_p1 = scmp.eq.s32.totalorder %s4069_s10, 0 }
 0x161   : > { %3756 = dma.done.wait (%p4678_p1), [#allocation7], 48   ;;  %p4679_p3 = pmov %p4678_p1 }
 0x162   : > { %p4680_p4 = pmov %p4678_p1 }
 0x163   : > { %3758 = vsyncadd (%p4679_p3), [#allocation7], 4294967248 }
 0x164   : > { %3760 = dma.done.wait (%p4680_p4), [#allocation10], 288   ;;  %p4681_p5 = pmov %p4678_p1 }
 0x165   : > { %p4682_p7 = pmov %p4678_p1 }
 0x166   : > { %3762 = vsyncadd (%p4681_p5), [#allocation10], 4294967008 }
 0x167   : > { %3764 = dma.done.wait (%p4682_p7), [#allocation13], 48   ;;  %p4683_p9 = pmov %p4678_p1 }
 0x168   : > { %p4684_p0 = pmov %p4678_p1 }
 0x169   : > { %3766 = vsyncadd (%p4683_p9), [#allocation13], 4294967248 }
 0x16a   : > { %3768 = dma.done.wait (%p4684_p0), [#allocation16], 48   ;;  %p4685_p11 = pmov %p4684_p0 }
 0x16b   : > { %p4686_p8 = pmov %p4684_p0 }
 0x16c   : > { %3770 = vsyncadd (%p4685_p11), [#allocation16], 4294967248 }
 0x16d   : > { %3772 = dma.done.wait (%p4686_p8), [#allocation19], 48   ;;  %p4687_p10 = pmov %p4684_p0 }
 0x16e   : > { %p4688_p12 = pmov %p4684_p0 }
 0x16f   : > { %3774 = vsyncadd (%p4687_p10), [#allocation19], 4294967248 }
 0x170   : > { %3776 = dma.done.wait (%p4688_p12), [#allocation22], 288   ;;  %p4689_p13 = pmov %p4684_p0 }
 0x171   : > { %p4690_p2 = pmov %p4684_p0 }
 0x172   : > { %3778 = vsyncadd (%p4689_p13), [#allocation22], 4294967008 }
 0x173   : > { %3780 = dma.done.wait (%p4690_p2), [#allocation25], 48   ;;  %p4691_p1 = pmov %p4684_p0 }
 0x174   : > { %p4692_p3 = pmov %p4684_p0 }
 0x175   : > { %3782 = vsyncadd (%p4691_p1), [#allocation25], 4294967248 }
 0x176   : > { %3784 = dma.done.wait (%p4692_p3), [#allocation28], 32   ;;  %p4693_p4 = pmov %p4684_p0 }
 0x177   : > { %p4694_p5 = pmov %p4684_p0 }
 0x178   : > { %3786 = vsyncadd (%p4693_p4), [#allocation28], 4294967264 }
 0x179   : > { %3788 = dma.done.wait (%p4694_p5), [#allocation31], 16   ;;  %p4695_p7 = pmov %p4684_p0 }
 0x17a   : > { %s4696_s19 = sld [smem:[#allocation51_spill]]  ;;  %p1298_p9 = scmp.lt.s32.totalorder %s4069_s10, 1  ;;  %vm1309_vm0 = vcmask 392192   ;;  %vm1513_vm1 = vcmask 326656   ;;  %v1306_v2 = vld [vmem:[%s1113_s17] sm:$0xff]  ;;  %v3870_v7 = vmov 48.0  }
 0x17b   : > { %3790 = vsyncadd (%p4695_p7), [#allocation31], 4294967280  ;;  %v1514_v4 = vsel %vm1513_vm1, %v1306_v2, 0.0  ;;  %3057 = vrcp.f32 %v3870_v7  ;;  %v3871_v9 = vmov 40.0   ;;  %s4697_s5 = sld [smem:[#allocation54_spill]]  ;;  %vm1574_vm4 = vcmask 1043456  }
 0x17c   : > { %s1299_s12 = scalar_select %p1298_p9, %s4069_s10, 1  ;;  %1515 = vadd.xlane.f32.xlu1 %v1514_v4  ;;  %3059 = vrcp.f32 %v3871_v9  ;;  %vm1416_vm14 = vcmask 261120  }
 0x17d   : > { %s4698_s8 = sld [smem:[#allocation58_spill]]  ;;  %s2621_s23 = sshll.u32 %s4329_s6, 4 }
 0x17e   : > { %s2748_s7 = sshll.u32 %s1299_s12, 4  ;;  %s4699_s18 = sld [smem:[#allocation60_spill]] }
 0x17f   : > { %s4700_s14 = sld [smem:[#allocation63_spill]]  ;;  %s3643_s16 = scalar_lea.hbm %s4033_s27, 16 }
 0x180   : > { %s1302_s15 = scalar_lea.vmem %s4696_s19, %s2748_s7  ;;  %s4701_s22 = sld [smem:[#allocation69_spill]] }
 0x181   : > { %v1304_v1 = vld [vmem:[%s1302_s15] sm:$0xff]  ;;  %v1305_v5 = vld [vmem:[%s1302_s15 + $0x8] sm:$0xff]  ;;  %v3058_v8 = vpop.eup %3057  ;;  %v2751_v36 = vld [vmem:[%s4697_s5 + $0x10] sm:$0xff]  ;;  %s4702_s17 = sld [smem:[#allocation64_spill]]  ;;  %s4448_s19 = scalar_lea.vmem [#allocation32], %s2621_s23 }
 0x182   : > { %v1310_v3 = vsel %vm1309_vm0, %v1304_v1, 0.0  ;;  %v1313_v6 = vsel %vm1309_vm0, %v1305_v5, 0.0  ;;  %v1317_v10 = vmul.f32 48.0, %v3058_v8  ;;  %v3060_v12 = vpop.eup %3059  ;;  %vm1321_vm2 = vweird.f32 %v3058_v8  ;;  %1403 = vmatpush.bf16.msra.mxu0 %v2751_v36  ;;  %v2750_v37 = vld [vmem:[%s4697_s5 + $0x8] sm:$0xff]  ;;  %v2749_v43 = vld [vmem:[%s4697_s5] sm:$0xff]  ;;  %s4703_s12 = sld [smem:[#allocation71_spill]] }
 0x183   : > { %1311 = vadd.xlane.f32.xlu0 %v1310_v3  ;;  %v1518_v14 = vmul.f32 40.0, %v3060_v12  ;;  %vm1522_vm3 = vweird.f32 %v3060_v12  ;;  %v1552_v38 = vld [vmem:[%s4698_s8 + $0x10] sm:$0xf]  ;;  %v2755_v46 = vld [vmem:[%s4698_s8 + $0x8] sm:$0xff]  ;;  %v2754_v48 = vld [vmem:[%s4698_s8] sm:$0xff]  ;;  %s4613_s7 = scalar_lea.vmem [#allocation35], %s4329_s6 }
 0x184   : > { %v1318_v11 = vsub.f32 1.0, %v1317_v10  ;;  %v1565_v39 = vunpack.c.l.b16 %v1552_v38  ;;  %s4704_s15 = sld [smem:[#allocation73_spill]]  ;;  %s4509_s23 = scalar_lea.vmem [#allocation33], %s2603_s13 }
 0x185   : > { %v1519_v16 = vsub.f32 1.0, %v1518_v14  ;;  %s2745_s13 = sshll.u32 %s4069_s10, 3  ;;  %s2189_s5 = sshll.u32 %s4509_s23, 4  ;;  %s2190_s5 = int_to_ptr.vmem [resolvable:$true] %s2189_s5 }
 0x186   : > { %v1319_v13 = vmul.f32 %v3058_v8, %v1318_v11  ;;  %1404 = vmatpush.bf16.msra.mxu0 %v2750_v37  ;;  %v1568_v42 = vpack.c.b16 %v1565_v39, %v1565_v39 }
 0x187   : > { %v1520_v18 = vmul.f32 %v3060_v12, %v1519_v16  ;;  %v1511_v16 = vld [vmem:[#allocation14] sm:$0x3] }
 0x188   : > { %v1320_v15 = vadd.f32 %v3058_v8, %v1319_v13  ;;  %v1576_v45 = vsel %vm1574_vm4, %v1568_v42, 0 }
 0x189   : > { %v1521_v21 = vadd.f32 %v3060_v12, %v1520_v18  ;;  %1583 = vmatpush.bf16.msra.mxu2 %v1576_v45 }
 0x18a   : > { %v1322_v17 = vsel %vm1321_vm2, %v3058_v8, %v1320_v15  ;;  %1405 = vmatpush.bf16.msra.mxu0 %v2749_v43  ;;  %v3872_v43 = vmov 32.0  }
 0x18b   : > { %1314 = vadd.xlane.f32.xlu0 %v1313_v6  ;;  %v1523_v24 = vsel %vm1522_vm3, %v3060_v12, %v1521_v21  ;;  %v1543_v21 = vperm.slane %v1511_v16, 0 }
 0x18d   : > { %1584 = vmatpush.bf16.msra.mxu2 %v2755_v46 }
 0x191   : > { %1585 = vmatpush.bf16.msra.mxu2 %v2754_v48 }
 0x1ef   : > { %v1516_v25 = vpop.xlane.xlu1 %1515 }
 0x1f0   : > { %v1524_v29 = vmul.f32 %v1523_v24, %v1516_v25 }
 0x1f2   : > { %v4386_v31 = vsub.f32 %v1306_v2, %v1524_v29 }
 0x1f4   : > { %v1526_v34 = vmul.f32 %v4386_v31, %v4386_v31 }
 0x1f6   : > { %v1312_v19 = vpop.xlane.xlu0 %1311  ;;  %v1527_v35 = vsel %vm1513_vm1, %v1526_v34, 0.0 }
 0x1f7   : > { %v1323_v20 = vmul.f32 %v1322_v17, %v1312_v19 }
 0x1f9   : > { %v4381_v22 = vsub.f32 %v1304_v1, %v1323_v20  ;;  %v1307_v1 = vld [vmem:[#allocation6] sm:$0x3] }
 0x1fa   : > { %v1364_v12 = vperm.slane %v1307_v1, 1 }
 0x1fb   : > { %v1327_v23 = vmul.f32 %v4381_v22, %v4381_v22 }
 0x1fd   : > { %v1329_v26 = vsel %vm1309_vm0, %v1327_v23, 0.0 }
 0x1fe   : > { %1330 = vadd.xlane.f32.xlu1 %v1329_v26  ;;  %v1315_v27 = vpop.xlane.xlu0 %1314 }
 0x1ff   : > { %v1324_v28 = vmul.f32 %v1322_v17, %v1315_v27 }
 0x201   : > { %v1326_v30 = vsub.f32 %v1305_v5, %v1324_v28  ;;  %v1361_v5 = vperm.slane %v1307_v1, 0  ;;  %v3046_v28 = vld [vmem:[#allocation8] ss:$0 sm:$0xff]  ;;  %v2753_v1 = vld [vmem:[#allocation11 + $0x8] sm:$0xff] }
 0x202   : > { %1503 = vmatpush.bf16.msra.mxu1 %v2753_v1 }
 0x203   : > { %v1328_v32 = vmul.f32 %v1326_v30, %v1326_v30 }
 0x205   : > { %v1332_v33 = vsel %vm1309_vm0, %v1328_v32, 0.0 }
 0x206   : > { %1333 = vadd.xlane.f32.xlu2 %v1332_v33 }
 0x20e   : > { %1528 = vadd.xlane.f32.xlu2 %v1527_v35 }
 0x271   : > { %v1331_v40 = vpop.xlane.xlu1 %1330 }
 0x272   : > { %v1335_v41 = vmul.f32 %v1331_v40, %v1322_v17 }
 0x274   : > { %v1337_v44 = vadd.f32 1e-05, %v1335_v41 }
 0x276   : > { %3061 = vrsqrt.f32 %v1337_v44  ;;  %vm1345_vm6 = vweird.f32 %v1337_v44 }
 0x279   : > { %v1334_v47 = vpop.xlane.xlu2 %1333 }
 0x27a   : > { %v1336_v49 = vmul.f32 %v1334_v47, %v1322_v17 }
 0x27c   : > { %v3062_v50 = vpop.eup %3061  ;;  %v1338_v51 = vadd.f32 1e-05, %v1336_v49 }
 0x27d   : > { %v1340_v52 = vmul.f32 %v3062_v50, %v1337_v44  ;;  %vm1346_vm5 = vweird.f32 %v3062_v50 }
 0x27e   : > { %3063 = vrsqrt.f32 %v1338_v51  ;;  %vm1347_vm7 = vmor %vm1345_vm6, %vm1346_vm5  ;;  %vm1355_vm9 = vweird.f32 %v1338_v51 }
 0x27f   : > { %v1341_v53 = vmul.f32 %v3062_v50, %v1340_v52 }
 0x281   : > { %v1342_v54 = vmul.f32 0.5, %v1341_v53  ;;  %v1529_v55 = vpop.xlane.xlu2 %1528 }
 0x282   : > { %v1530_v56 = vmul.f32 %v1529_v55, %v1523_v24  ;;  %v1545_v24 = vperm.slane %v1511_v16, 1 }
 0x283   : > { %v1343_v57 = vsub.f32 1.5, %v1342_v54 }
 0x284   : > { %v3064_v58 = vpop.eup %3063  ;;  %v1531_v59 = vadd.f32 1e-05, %v1530_v56 }
 0x285   : > { %v1344_v60 = vmul.f32 %v3062_v50, %v1343_v57  ;;  %v1350_v61 = vmul.f32 %v3064_v58, %v1338_v51  ;;  %vm1356_vm8 = vweird.f32 %v3064_v58 }
 0x286   : > { %3065 = vrsqrt.f32 %v1531_v59  ;;  %vm1357_vm10 = vmor %vm1355_vm9, %vm1356_vm8  ;;  %vm1538_vm11 = vweird.f32 %v1531_v59 }
 0x287   : > { %v1351_v62 = vmul.f32 %v3064_v58, %v1350_v61  ;;  %v1348_v63 = vsel %vm1347_vm7, %v3062_v50, %v1344_v60  ;;  %3067 = vrcp.f32 %v3872_v43 }
 0x288   : > { %v1359_v4 = vmul.f32 %v1348_v63, %v4381_v22 }
 0x289   : > { %v1352_v0 = vmul.f32 0.5, %v1351_v62 }
 0x28a   : > { %v1362_v11 = vmul.f32 %v1361_v5, %v1359_v4  ;;  %v2752_v4 = vld [vmem:[#allocation11] sm:$0xff] }
 0x28b   : > { %v1353_v2 = vsub.f32 1.5, %v1352_v0  ;;  %1504 = vmatpush.bf16.msra.mxu1 %v2752_v4  ;;  %v3048_v4 = vld [vmem:[#allocation12] ss:$0 sm:$0xff] }
 0x28c   : > { %v3066_v3 = vpop.eup %3065  ;;  %v1365_v17 = vadd.f32 %v1364_v12, %v1362_v11 }
 0x28d   : > { %v1354_v6 = vmul.f32 %v3064_v58, %v1353_v2  ;;  %v1533_v7 = vmul.f32 %v3066_v3, %v1531_v59  ;;  %vm1539_vm12 = vweird.f32 %v3066_v3  ;;  %v3068_v44 = vpop.eup %3067 }
 0x28e   : > { %vm1540_vm13 = vmor %vm1538_vm11, %vm1539_vm12  ;;  %v1424_v45 = vmul.f32 32.0, %v3068_v44  ;;  %vm1428_vm15 = vweird.f32 %v3068_v44 }
 0x28f   : > { %v1358_v8 = vsel %vm1357_vm10, %v3064_v58, %v1354_v6  ;;  %v1534_v9 = vmul.f32 %v3066_v3, %v1533_v7  ;;  %v2757_v6 = vld [vmem:[%s4699_s18 + $0x8] sm:$0xff]  ;;  %v1667_v7 = vld [vmem:[%s4700_s14 + $0x10] sm:$0xf] }
 0x290   : > { %v1360_v10 = vmul.f32 %v1358_v8, %v1326_v30  ;;  %v1425_v46 = vsub.f32 1.0, %v1424_v45  ;;  %1649 = vmatpush.bf16.msra.mxu3 %v2757_v6  ;;  %v2756_v8 = vld [vmem:[%s4699_s18] sm:$0xff] }
 0x291   : > { %v1535_v13 = vmul.f32 0.5, %v1534_v9  ;;  %v1680_v9 = vunpack.c.l.b16 %v1667_v7 }
 0x292   : > { %v1363_v14 = vmul.f32 %v1361_v5, %v1360_v10  ;;  %v1426_v47 = vmul.f32 %v3068_v44, %v1425_v46  ;;  %v1592_v46 = vld [vmem:[#allocation17] sm:$0x3] }
 0x293   : > { %v1536_v15 = vsub.f32 1.5, %v1535_v13 }
 0x294   : > { %v1366_v18 = vadd.f32 %v1364_v12, %v1363_v14  ;;  %v1427_v48 = vadd.f32 %v3068_v44, %v1426_v47  ;;  %v1683_v12 = vpack.c.b16 %v1680_v9, %v1680_v9  ;;  %1650 = vmatpush.bf16.msra.mxu3 %v2756_v8  ;;  %v1770_v9 = vlaneseq }
 0x295   : > { %v1537_v19 = vmul.f32 %v3066_v3, %v1536_v15 }
 0x296   : > { %v1367_v20 = vpack.c.bf16 %v1366_v18, %v1365_v17  ;;  %v4409_v49 = vsel %vm1428_vm15, %v3068_v44, %v1427_v48  ;;  %v1690_v15 = vsel %vm1574_vm4, %v1683_v12, 0  ;;  %v2759_v17 = vld [vmem:[%s4700_s14 + $0x8] sm:$0xff] }
 0x297   : > { %v1541_v22 = vsel %vm1540_vm13, %v3066_v3, %v1537_v19  ;;  %1697 = vmatpush.bf16.msrb.mxu1 %v1690_v15  ;;  %v3050_v12 = vld [vmem:[#allocation18] ss:$0 sm:$0xff] }
 0x298   : > { %2637 = vmatmul.msk.bf16.vlgmr.msra.gmra.mxu0 %vm1309_vm0, %v1367_v20  ;;  %v4402_v23 = vmul.f32 %v1541_v22, %v4386_v31  ;;  %v3047_v31 = vld [vmem:[#allocation15] ss:$0 sm:$0xff]  ;;  %v2758_v22 = vld [vmem:[%s4700_s14] sm:$0xff] }
 0x29a   : > { %v1544_v25 = vmul.f32 %v1543_v21, %v4402_v23 }
 0x29b   : > { %1698 = vmatpush.bf16.msrb.mxu1 %v2759_v17 }
 0x29c   : > { %v1546_v26 = vadd.f32 %v1545_v24, %v1544_v25 }
 0x29e   : > { %v1547_v27 = vpack.c.bf16 %v1546_v26, %v1546_v26 }
 0x29f   : > { %1699 = vmatpush.bf16.msrb.mxu1 %v2758_v22 }
 0x2a0   : > { %2655 = vmatmul.msk.bf16.vlgmr.msra.gmra.mxu2 %vm1513_vm1, %v1547_v27 }
 0x315   : > { %v1407_v29 = vpop.f32.mrf.mxu0 }
 0x316   : > { %v1408_v30 = vadd.f32 %v3046_v28, %v1407_v29 }
 0x318   : > { %v1412_v32 = vmax.f32 %v1408_v30, 0.0 }
 0x31a   : > { %v1417_v33 = vsel %vm1416_vm14, %v1412_v32, 0.0 }
 0x31b   : > { %1418 = vadd.xlane.f32.xlu0 %v1417_v33  ;;  %v1414_v33 = vld [vmem:[#allocation9] sm:$0x3] }
 0x31c   : > { %v1471_v44 = vperm.slane %v1414_v33, 1 }
 0x31d   : > { %v1409_v34 = vpop.f32.mrf.mxu0 }
 0x31e   : > { %v1410_v35 = vadd.f32 %v3046_v28, %v1409_v34 }
 0x320   : > { %v1413_v36 = vmax.f32 %v1410_v35, 0.0 }
 0x322   : > { %v1420_v37 = vsel %vm1416_vm14, %v1413_v36, 0.0 }
 0x323   : > { %1421 = vadd.xlane.f32.xlu1 %v1420_v37  ;;  %v1587_v38 = vpop.f32.mrf.mxu2  ;;  %v1468_v37 = vperm.slane %v1414_v33, 0 }
 0x324   : > { %v1588_v39 = vadd.f32 %v3047_v31, %v1587_v38 }
 0x326   : > { %v1591_v40 = vmax.f32 %v1588_v39, 0.0 }
 0x328   : > { %v1594_v41 = vsel %vm1416_vm14, %v1591_v40, 0.0 }
 0x329   : > { %1595 = vadd.xlane.f32.xlu2 %v1594_v41 }
 0x32b   : > { %v1589_v42 = vpop.f32.mrf.mxu2 }
 0x38e   : > { %v1419_v50 = vpop.xlane.xlu0 %1418 }
 0x38f   : > { %v1430_v51 = vmul.f32 %v4409_v49, %v1419_v50 }
 0x391   : > { %v4412_v52 = vsub.f32 %v1412_v32, %v1430_v51 }
 0x393   : > { %v1434_v53 = vmul.f32 %v4412_v52, %v4412_v52 }
 0x395   : > { %v1436_v54 = vsel %vm1416_vm14, %v1434_v53, 0.0 }
 0x396   : > { %v1422_v55 = vpop.xlane.xlu1 %1421  ;;  %1437 = vadd.xlane.f32.xlu0 %v1436_v54 }
 0x397   : > { %v1431_v56 = vmul.f32 %v4409_v49, %v1422_v55 }
 0x399   : > { %v4418_v57 = vsub.f32 %v1413_v36, %v1431_v56  ;;  %v1618_v56 = vperm.slane %v1592_v46, 1 }
 0x39b   : > { %v1435_v58 = vmul.f32 %v4418_v57, %v4418_v57 }
 0x39c   : > { %v1596_v59 = vpop.xlane.xlu2 %1595 }
 0x39d   : > { %v1597_v60 = vmul.f32 %v1596_v59, %v4409_v49  ;;  %v1439_v61 = vsel %vm1416_vm14, %v1435_v58, 0.0 }
 0x39e   : > { %1440 = vadd.xlane.f32.xlu1 %v1439_v61 }
 0x39f   : > { %v4424_v62 = vsub.f32 %v1591_v40, %v1597_v60 }
 0x3a1   : > { %v1599_v63 = vmul.f32 %v4424_v62, %v4424_v62 }
 0x3a3   : > { %v1600_v0 = vsel %vm1416_vm14, %v1599_v63, 0.0 }
 0x3a4   : > { %1601 = vadd.xlane.f32.xlu2 %v1600_v0 }
 0x409   : > { %v1438_v2 = vpop.xlane.xlu0 %1437 }
 0x40a   : > { %v1442_v3 = vmul.f32 %v1438_v2, %v4409_v49 }
 0x40c   : > { %v1444_v5 = vadd.f32 1e-05, %v1442_v3  ;;  %v2764_v3 = vld [vmem:[%s4701_s22 + $0x10] sm:$0xff] }
 0x40e   : > { %3069 = vrsqrt.f32 %v1444_v5  ;;  %vm1452_vm2 = vweird.f32 %v1444_v5 }
 0x411   : > { %v1441_v10 = vpop.xlane.xlu1 %1440 }
 0x412   : > { %v1443_v11 = vmul.f32 %v1441_v10, %v4409_v49  ;;  %v4452_v10 = vshrl.u32 %v1770_v9, 7 }
 0x414   : > { %v3070_v13 = vpop.eup %3069  ;;  %v1445_v14 = vadd.f32 1e-05, %v1443_v11  ;;  %v1882_v15 = vadd.s32 8, %v4452_v10  ;;  %vm1973_vm10 = vcmp.lt.s32.totalorder %v4452_v10, 7  ;;  %v1888_v33 = vadd.s32 4294967295, %v4452_v10 }
 0x415   : > { %v1447_v16 = vmul.f32 %v3070_v13, %v1444_v5  ;;  %vm1453_vm0 = vweird.f32 %v3070_v13  ;;  %v3049_v5 = vld [vmem:[#allocation26 + $0x1] ss:$0 sm:$0xff]  ;;  %vm1885_vm11 = vcmp.lt.s32.totalorder %v4452_v10, 1 }
 0x416   : > { %3071 = vrsqrt.f32 %v1445_v14  ;;  %vm1454_vm3 = vmor %vm1452_vm2, %vm1453_vm0  ;;  %vm1462_vm5 = vweird.f32 %v1445_v14  ;;  %vm1890_vm13 = vcmp.ge.s32.totalorder %v1888_v33, 0 }
 0x417   : > { %v1448_v18 = vmul.f32 %v3070_v13, %v1447_v16  ;;  %v1602_v19 = vpop.xlane.xlu2 %1601 }
 0x418   : > { %v1603_v20 = vmul.f32 %v1602_v19, %v4409_v49  ;;  %v3051_v19 = vld [vmem:[%s4702_s17] ss:$0 sm:$0xff]  ;;  %s4705_s17 = sld [smem:[#allocation74_spill]] }
 0x419   : > { %v1449_v21 = vmul.f32 0.5, %v1448_v18 }
 0x41a   : > { %v1604_v24 = vadd.f32 1e-05, %v1603_v20  ;;  %v2767_v20 = vld [vmem:[%s4701_s22 + $0x28] sm:$0xff] }
 0x41b   : > { %v1450_v25 = vsub.f32 1.5, %v1449_v21 }
 0x41c   : > { %v3072_v26 = vpop.eup %3071  ;;  %3073 = vrsqrt.f32 %v1604_v24  ;;  %vm1611_vm8 = vweird.f32 %v1604_v24 }
 0x41d   : > { %v1451_v27 = vmul.f32 %v3070_v13, %v1450_v25  ;;  %v1457_v28 = vmul.f32 %v3072_v26, %v1445_v14  ;;  %vm1463_vm4 = vweird.f32 %v3072_v26 }
 0x41e   : > { %vm1464_vm6 = vmor %vm1462_vm5, %vm1463_vm4  ;;  %vm1880_vm4 = vcmask 122880  }
 0x41f   : > { %v1458_v29 = vmul.f32 %v3072_v26, %v1457_v28  ;;  %v1455_v30 = vsel %vm1454_vm3, %v3070_v13, %v1451_v27 }
 0x420   : > { %v1466_v31 = vmul.f32 %v1455_v30, %v4412_v52  ;;  %v1616_v52 = vperm.slane %v1592_v46, 0 }
 0x421   : > { %v1459_v32 = vmul.f32 0.5, %v1458_v29 }
 0x422   : > { %v3074_v34 = vpop.eup %3073  ;;  %v1469_v43 = vmul.f32 %v1468_v37, %v1466_v31  ;;  %v2762_v31 = vld [vmem:[%s4701_s22] sm:$0xff] }
 0x423   : > { %v1460_v35 = vsub.f32 1.5, %v1459_v32  ;;  %v1606_v36 = vmul.f32 %v3074_v34, %v1604_v24  ;;  %vm1612_vm7 = vweird.f32 %v3074_v34  ;;  %v2763_v24 = vld [vmem:[%s4701_s22 + $0x8] sm:$0xff] }
 0x424   : > { %vm1613_vm9 = vmor %vm1611_vm8, %vm1612_vm7  ;;  %v1472_v50 = vadd.f32 %v1471_v44, %v1469_v43  ;;  %vm1772_vm8 = vcmp.eq.s32.totalorder %v4452_v10, 0 }
 0x425   : > { %v1461_v38 = vmul.f32 %v3072_v26, %v1460_v35  ;;  %v1607_v39 = vmul.f32 %v3074_v34, %v1606_v36  ;;  %v2766_v35 = vld [vmem:[%s4701_s22 + $0x20] sm:$0xff] }
 0x427   : > { %v1465_v40 = vsel %vm1464_vm6, %v3072_v26, %v1461_v38  ;;  %v1608_v41 = vmul.f32 0.5, %v1607_v39  ;;  %v1977_v26 = vadd.s32 1, %v1882_v15 }
 0x428   : > { %v1467_v42 = vmul.f32 %v1465_v40, %v4418_v57  ;;  %v1656_v57 = vld [vmem:[#allocation20] sm:$0x3]  ;;  %v3873_v40 = vmov 1.0  }
 0x429   : > { %v1609_v45 = vsub.f32 1.5, %v1608_v41  ;;  %v1658_v60 = vperm.slane %v1656_v57, 0  ;;  %v1660_v0 = vperm.slane %v1656_v57, 1  ;;  %vm1981_vm12 = vcmp.lt.s32.totalorder %v1977_v26, 16  ;;  %v2768_v26 = vld [vmem:[%s4703_s12] sm:$0xff] }
 0x42a   : > { %v1470_v47 = vmul.f32 %v1468_v37, %v1467_v42 }
 0x42b   : > { %v1610_v48 = vmul.f32 %v3074_v34, %v1609_v45  ;;  %v1659_v63 = vmul.f32 %v1658_v60, %v4402_v23 }
 0x42c   : > { %v1473_v51 = vadd.f32 %v1471_v44, %v1470_v47 }
 0x42d   : > { %v1614_v53 = vsel %vm1613_vm9, %v3074_v34, %v1610_v48  ;;  %v1661_v1 = vadd.f32 %v1660_v0, %v1659_v63  ;;  %vm2088_vm9 = vcmask 130048  }
 0x42e   : > { %v1474_v54 = vpack.c.bf16 %v1473_v51, %v1472_v50  ;;  %v1615_v55 = vmul.f32 %v1614_v53, %v4424_v62  ;;  %v2765_v62 = vld [vmem:[%s4701_s22 + $0x18] sm:$0xff] }
 0x42f   : > { %v1662_v2 = vpack.c.bf16 %v1661_v1, %v1661_v1  ;;  %1934 = vmatpush.bf16.msrb.mxu0 %v2765_v62 }
 0x430   : > { %2646 = vmatmul.msk.bf16.vlgmr.msra.gmra.mxu1 %vm1416_vm14, %v1474_v54  ;;  %v1617_v58 = vmul.f32 %v1616_v52, %v1615_v55 }
 0x432   : > { %v1619_v59 = vadd.f32 %v1618_v56, %v1617_v58 }
 0x433   : > { %1935 = vmatpush.bf16.msrb.mxu0 %v2764_v3 }
 0x434   : > { %v1620_v61 = vpack.c.bf16 %v1619_v59, %v1619_v59 }
 0x436   : > { %2664 = vmatmul.msk.bf16.vlgmr.msra.gmra.mxu3 %vm1416_vm14, %v1620_v61 }
 0x440   : > { %2673 = vmatmul.msk.bf16.vlgmr.msrb.gmra.mxu1 %vm1513_vm1, %v1662_v2  ;;  %vm1847_vm1 = vcmask 253952  }
 0x4ad   : > { %v1506_v6 = vpop.f32.mrf.mxu1 }
 0x4ae   : > { %v1507_v7 = vadd.f32 %v3048_v4, %v1506_v6 }
 0x4b0   : > { %v1778_v8 = vadd.f32 %v3049_v5, %v1507_v7 }
 0x4b2   : > { %1783 = vst.msk [vmem:[%s4448_s19] sm:$0xff] %vm1416_vm14, %v1778_v8  ;;  %v1815_v29 = vmul.f32 %v1778_v8, %v1778_v8  ;;  %v1971_v30 = vrot.slane %v1778_v8, 1  ;;  %v1883_v38 = vrot.slane %v1778_v8, 7 }
 0x4b5   : > { %v1508_v23 = vpop.f32.mrf.mxu1 }
 0x4b6   : > { %v1509_v11 = vadd.f32 %v3048_v4, %v1508_v23 }
 0x4b8   : > { %v1779_v13 = vadd.f32 %v3049_v5, %v1509_v11 }
 0x4b9   : > { %v1652_v14 = vpop.f32.mrf.mxu3 }
 0x4ba   : > { %v4455_v16 = vadd.f32 %v3050_v12, %v1652_v14  ;;  %2683 = vmatpush.xpose.msk.msra.mxu1 %vm1416_vm14, %v1779_v13  ;;  %v1816_v17 = vmul.f32 %v1779_v13, %v1779_v13  ;;  %v1907_v18 = vpack.c.bf16 %v1779_v13, %v1778_v8  ;;  %1784 = vst.msk [vmem:[%s4448_s19 + $0x8] sm:$0xff] %vm1416_vm14, %v1779_v13  ;;  %v1972_v25 = vrot.slane %v1779_v13, 1 }
 0x4bb   : > { %v1884_v32 = vrot.slane %v1779_v13, 7 }
 0x4bc   : > { %2686 = vmatpush.xpose.msk.msrb.mxu2 %vm1416_vm14, %v1816_v17  ;;  %2701 = vmatmul.msk.bf16.vlgmr.msrb.gmra.mxu0 %vm1416_vm14, %v1907_v18  ;;  %v1846_v21 = vmul.f32 %v4455_v16, %v4455_v16  ;;  %v1975_v37 = vsel %vm1973_vm10, %v1972_v25, %v1971_v30  ;;  %v1974_v42 = vsel %vm1973_vm10, %v1971_v30, %v1972_v25 }
 0x4bd   : > { %v1701_v22 = vpop.f32.mrf.mxu1  ;;  %v1887_v41 = vsel %vm1885_vm11, %v1884_v32, %v1883_v38  ;;  %v1989_v43 = vsel %vm1981_vm12, %v1975_v37, 0.0  ;;  %v1886_v45 = vsel %vm1885_vm11, %v1883_v38, %v1884_v32 }
 0x4be   : > { %v1702_v27 = vadd.f32 %v3051_v19, %v1701_v22  ;;  %2684 = vmatpush.xpose.msk.msra.mxu1 %vm1416_vm14, %v1778_v8  ;;  %v1848_v28 = vsel %vm1847_vm1, %v1846_v21, 0.0  ;;  %v1900_v46 = vsel %vm1890_vm13, %v1887_v41, 0.0  ;;  %v1990_v47 = vpack.c.bf16 %v1989_v43, %v1974_v42  ;;  %v2760_v21 = vld [vmem:[#allocation23] sm:$0xff]  ;;  %v2769_v22 = vld [vmem:[%s4703_s12 + $0x8] sm:$0xff] }
 0x4bf   : > { %1849 = vadd.xlane.f32.xlu2 %v1848_v28  ;;  %v1902_v48 = vpack.c.bf16 %v1886_v45, %v1900_v46 }
 0x4c0   : > { %v1705_v34 = vmax.f32 %v1702_v27, 0.0  ;;  %2687 = vmatpush.xpose.msk.msrb.mxu2 %vm1416_vm14, %v1815_v29 }
 0x4c1   : > { %v1654_v36 = vpop.f32.mrf.mxu3  ;;  %2685 = vmatmul.msk.f32.vlgmr.msra.gmra.mxu1 %vm1416_vm14, %v4455_v16 }
 0x4c2   : > { %2017 = vmatpush.bf16.msrb.mxu1 %v2767_v20  ;;  %v1708_v39 = vsel %vm1416_vm14, %v1705_v34, 0.0  ;;  %v2761_v20 = vld [vmem:[#allocation23 + $0x8] sm:$0xff]  ;;  %v1706_v36 = vld [vmem:[#allocation21] sm:$0x3] }
 0x4c3   : > { %1709 = vadd.xlane.f32.xlu0 %v1708_v39  ;;  %2688 = vmatmul.msk.f32.vlgmr.msrb.gmra.mxu2 %vm1416_vm14, %v3873_v40  ;;  %v1730_v37 = vperm.slane %v1706_v36, 0  ;;  %v1732_v40 = vperm.slane %v1706_v36, 1 }
 0x4c4   : > { %1963 = vmatpush.bf16.msra.mxu2 %v2763_v24  ;;  %1763 = vmatpush.bf16.msrb.mxu3 %v2761_v20 }
 0x4c5   : > { %v1703_v44 = vpop.f32.mrf.mxu1 }
 0x4c6   : > { %2018 = vmatpush.bf16.msrb.mxu1 %v2766_v35 }
 0x4c8   : > { %1964 = vmatpush.bf16.msra.mxu2 %v2762_v31  ;;  %1764 = vmatpush.bf16.msrb.mxu3 %v2760_v21 }
 0x4c9   : > { %2723 = vmatmul.msk.bf16.vlgmr.msrb.gmra.mxu1 %vm1416_vm14, %v1990_v47 }
 0x4cb   : > { %2710 = vmatmul.msk.bf16.vlgmr.msra.gmra.mxu2 %vm1416_vm14, %v1902_v48 }
 0x4cc   : > { %2065 = vmatpush.bf16.msra.mxu3 %v2769_v22 }
 0x4d0   : > { %2066 = vmatpush.bf16.msra.mxu3 %v2768_v26 }
 0x532   : > { %v1850_v50 = vpop.xlane.xlu2 %1849 }
 0x533   : > { %3075 = vrsqrt.f32 %v1850_v50  ;;  %vm1871_vm15 = vcmp.eq.f32.partialorder %v1850_v50, inf  ;;  %v1874_v7 = vand.u32 2147483648, %v1850_v50  ;;  %vm1873_vm2 = vcmp.eq.f32.partialorder %v1850_v50, 0.0 }
 0x536   : > { %v1710_v51 = vpop.xlane.xlu0 %1709 }
 0x537   : > { %v1711_v52 = vmul.f32 %v1710_v51, %v4409_v49 }
 0x539   : > { %v4489_v53 = vsub.f32 %v1705_v34, %v1711_v52  ;;  %v3076_v54 = vpop.eup %3075  ;;  %v1937_v34 = vpop.f32.mrf.mxu0  ;;  %v3052_v52 = vld [vmem:[#allocation27] ss:$0 sm:$0xff] }
 0x53a   : > { %v1865_v57 = vmul.f32 %v3076_v54, %v1850_v50 }
 0x53b   : > { %v1713_v55 = vmul.f32 %v4489_v53, %v4489_v53 }
 0x53c   : > { %v1866_v58 = vmul.f32 %v3076_v54, %v1865_v57 }
 0x53d   : > { %v1714_v56 = vsel %vm1416_vm14, %v1713_v55, 0.0 }
 0x53e   : > { %1715 = vadd.xlane.f32.xlu1 %v1714_v56  ;;  %v1867_v59 = vmul.f32 0.5, %v1866_v58  ;;  %v1812_v18 = vpop.f32.mrf.mxu1  ;;  %v2770_v58 = vld [vmem:[%s4704_s15] sm:$0xff]  ;;  %s2151_s15 = sand.u32 1, %s4069_s10  }
 0x53f   : > { %2099 = vmatpush.bf16.msra.mxu0 %v2770_v58  ;;  %s4522_s8 = scalar_lea.sflag [#allocation34], %s2151_s15 }
 0x540   : > { %v1868_v61 = vsub.f32 1.5, %v1867_v59  ;;  %v3053_v59 = vld [vmem:[#allocation24] ss:$0 sm:$0xff] }
 0x541   : > { %v1939_v44 = vpop.f32.mrf.mxu0 }
 0x542   : > { %v1869_v0 = vmul.f32 %v3076_v54, %v1868_v61  ;;  %v3054_v61 = vld [vmem:[#allocation26] ss:$0 sm:$0xff] }
 0x544   : > { %v1870_v62 = vmul.f32 %v1869_v0, %v1850_v50 }
 0x546   : > { %v1843_v60 = vpop.f32.mrf.mxu2  ;;  %v1872_v5 = vsel %vm1871_vm15, %v1850_v50, %v1870_v62  ;;  %v2020_v38 = vpop.f32.mrf.mxu1 }
 0x547   : > { %3077 = vrsqrt.f32 %v1843_v60  ;;  %vm1858_vm0 = vcmp.eq.f32.partialorder %v1843_v60, inf  ;;  %v1861_v8 = vand.u32 2147483648, %v1843_v60  ;;  %vm1860_vm3 = vcmp.eq.f32.partialorder %v1843_v60, 0.0 }
 0x548   : > { %v1875_v23 = vsel %vm1873_vm2, %v1874_v7, %v1872_v5 }
 0x549   : > { %v1876_v13 = vmax.f32 %v1875_v23, 1e-08 }
 0x54d   : > { %v3078_v63 = vpop.eup %3077 }
 0x54e   : > { %v1852_v1 = vmul.f32 %v3078_v63, %v1843_v60  ;;  %v1966_v32 = vpop.f32.mrf.mxu2  ;;  %v2022_v48 = vpop.f32.mrf.mxu1 }
 0x54f   : > { %v1967_v47 = vadd.f32 %v1966_v32, %v1937_v34 }
 0x550   : > { %v1853_v2 = vmul.f32 %v3078_v63, %v1852_v1 }
 0x551   : > { %v2025_v51 = vadd.f32 %v2020_v38, %v1967_v47 }
 0x552   : > { %v1854_v3 = vmul.f32 0.5, %v1853_v2 }
 0x553   : > { %v2031_v55 = vadd.f32 %v3052_v52, %v2025_v51 }
 0x554   : > { %v1855_v4 = vsub.f32 1.5, %v1854_v3  ;;  %v3055_v3 = vld [vmem:[#allocation29] ss:$0 sm:$0xff] }
 0x556   : > { %v1856_v6 = vmul.f32 %v3078_v63, %v1855_v4  ;;  %v1968_v42 = vpop.f32.mrf.mxu2 }
 0x557   : > { %v1969_v45 = vadd.f32 %v1968_v42, %v1939_v44 }
 0x558   : > { %v1857_v9 = vmul.f32 %v1856_v6, %v1843_v60 }
 0x559   : > { %v2026_v50 = vadd.f32 %v2022_v48, %v1969_v45 }
 0x55a   : > { %v1859_v11 = vsel %vm1858_vm0, %v1843_v60, %v1857_v9  ;;  %v3874_v9 = vmov 0  }
 0x55b   : > { %v1862_v12 = vsel %vm1860_vm3, %v1861_v8, %v1859_v11  ;;  %v2032_v54 = vadd.f32 %v3052_v52, %v2026_v50  ;;  %3045 = vset.pattern.permute.xlu0 %v3874_v9  ;;  %v3056_v11 = vld [vmem:[%s4705_s17] ss:$0 sm:$0xff] }
 0x55c   : > { %v1863_v14 = vmax.f32 %v1862_v12, 1e-08 }
 0x55d   : > { %v2034_v56 = vmax.f32 %v2032_v54, 0.0 }
 0x55e   : > { %v1877_v15 = vmul.f32 %v1876_v13, %v1863_v14 }
 0x560   : > { %3079 = vrcp.f32 %v1877_v15 }
 0x566   : > { %v3080_v17 = vpop.eup %3079 }
 0x567   : > { %v1879_v19 = vmul.f32 %v3080_v17, %v1812_v18  ;;  %v2108_v18 = vld [vmem:[#allocation30] sm:$0x1] }
 0x569   : > { %1881 = vst.msk [vmem:[%s4613_s7] sm:$0x1] %vm1880_vm4, %v1879_v19  ;;  %s2187_s7 = scalar_lea.hbm %s4033_s27, %s2745_s13 }
 0x56a   : > { %s2191_s17 = sshll.u32 %s2187_s7, 4  ;;  %s2192_s17 = int_to_ptr.hbm [resolvable:$true] %s2191_s17 }
 0x56b   : > { %s3637_s12 = sshra.s32 %s2192_s17, 4  ;;  %s3638_s12 = int_to_ptr.hbm [resolvable:$true] %s3637_s12 }
 0x56c   : > { %s3639_s14 = scalar_lea.hbm %s3638_s12, 8  ;;  %p3644_p10 = scmp.lt.s32.totalorder %s3638_s12, %s4033_s27 }
 0x56d   : > { %p3640_p0 = scmp.ne.s32.totalorder %s3638_s12, %s3639_s14  ;;  %p3645_p12 = scmp.lt.s32.totalorder %s3643_s16, %s3639_s14 }
 0x56f   : > { %p3641_p11 = pnand %p3640_p0, %p4302_p6  ;;  %p3646_p13 = por %p3645_p12, %p3644_p10 }
 0x571   : > { %p3642_p8 = pneg %p3641_p11 }
 0x573   : > { %p3647_p2 = pnand %p3646_p13, %p3642_p8 }
 0x5b1   : > { %v1716_v24 = vpop.xlane.xlu1 %1715 }
 0x5b2   : > { %v1717_v25 = vmul.f32 %v1716_v24, %v4409_v49 }
 0x5b4   : > { %v1718_v27 = vadd.f32 1e-05, %v1717_v25 }
 0x5b6   : > { %3081 = vrsqrt.f32 %v1718_v27  ;;  %vm1725_vm6 = vweird.f32 %v1718_v27 }
 0x5bc   : > { %v3082_v28 = vpop.eup %3081 }
 0x5bd   : > { %v1720_v29 = vmul.f32 %v3082_v28, %v1718_v27  ;;  %vm1726_vm5 = vweird.f32 %v3082_v28 }
 0x5be   : > { %vm1727_vm7 = vmor %vm1725_vm6, %vm1726_vm5 }
 0x5bf   : > { %v1721_v30 = vmul.f32 %v3082_v28, %v1720_v29 }
 0x5c1   : > { %v1722_v33 = vmul.f32 0.5, %v1721_v30 }
 0x5c3   : > { %v1723_v35 = vsub.f32 1.5, %v1722_v33 }
 0x5c5   : > { %v1724_v31 = vmul.f32 %v3082_v28, %v1723_v35 }
 0x5c7   : > { %v1728_v49 = vsel %vm1727_vm7, %v3082_v28, %v1724_v31 }
 0x5c8   : > { %v1729_v39 = vmul.f32 %v1728_v49, %v4489_v53  ;;  %v2033_v53 = vmax.f32 %v2031_v55, 0.0 }
 0x5ca   : > { %v1731_v41 = vmul.f32 %v1730_v37, %v1729_v39  ;;  %v2035_v57 = vpack.c.bf16 %v2034_v56, %v2033_v53 }
 0x5cc   : > { %v1733_v43 = vadd.f32 %v1732_v40, %v1731_v41 }
 0x5ce   : > { %v1734_v46 = vpack.c.bf16 %v1733_v43, %v1733_v43 }
 0x5d0   : > { %2682 = vmatmul.msk.bf16.vlgmr.msrb.gmra.mxu3 %vm1416_vm14, %v1734_v46 }
 0x5e0   : > { %2732 = vmatmul.msk.bf16.vlgmr.msra.gmra.mxu3 %vm1416_vm14, %v2035_v57 }
 0x653   : > { %v1766_v60 = vpop.f32.mrf.mxu3 }
 0x654   : > { %v1767_v63 = vadd.f32 %v3053_v59, %v1766_v60 }
 0x656   : > { %v1775_v0 = vsel %vm1772_vm8, %v4455_v16, %v1767_v63  ;;  %v2109_v16 = vld [vmem:[#allocation2] sm:$0x1] }
 0x657   : > { %v1782_v1 = vadd.f32 %v3054_v61, %v1775_v0  ;;  %2112 = vperm.xlu0 %3045, %v2109_v16  }
 0x659   : > { %1785 = vst.msk [vmem:[%s4509_s23] sm:$0xff] %vm1416_vm14, %v1782_v1 }
 0x65b   : > { %v1768_v2 = vpop.f32.mrf.mxu3 }
 0x663   : > { %v2068_v62 = vpop.f32.mrf.mxu3 }
 0x664   : > { %v2069_v4 = vadd.f32 %v3055_v3, %v2068_v62 }
 0x666   : > { %v2073_v7 = vmax.f32 %v2069_v4, 0.0 }
 0x66b   : > { %v2070_v5 = vpop.f32.mrf.mxu3 }
 0x66c   : > { %v2071_v6 = vadd.f32 %v3055_v3, %v2070_v5 }
 0x66e   : > { %v2074_v10 = vmax.f32 %v2071_v6, 0.0 }
 0x670   : > { %v2075_v8 = vpack.c.bf16 %v2074_v10, %v2073_v7 }
 0x672   : > { %2737 = vmatmul.msk.bf16.vlgmr.msra.gmra.mxu0 %vm2088_vm9, %v2075_v8 }
 0x6ef   : > { %v2101_v23 = vpop.f32.mrf.mxu0 }
 0x6f0   : > { %v2102_v14 = vadd.f32 %v3056_v11, %v2101_v23 }
 0x6f2   : > { %v2106_v17 = vmax.f32 %v2102_v14, 0.0 }
 0x6f7   : > { %v2103_v12 = vpop.f32.mrf.mxu0 }
 0x6f8   : > { %v2104_v13 = vadd.f32 %v3056_v11, %v2103_v12 }
 0x6fa   : > { %v2107_v15 = vmax.f32 %v2104_v13, 0.0 }
 0x6fc   : > { %2738 = vmatpush.xpose.msk.msrb.mxu2 %vm2088_vm9, %v2107_v15 }
 0x700   : > { %2739 = vmatpush.xpose.msk.msrb.mxu2 %vm2088_vm9, %v2106_v17 }
 0x703   : > { %2740 = vmatmul.msk.f32.vlgmr.msrb.gmra.mxu2 %vm2088_vm9, %v2108_v18 }
 0x704   : > { %3650 = shalt.err (!%p3647_p2)
}
 0x705   : > { %s4706_s7 = sld [smem:[#allocation76_spill]]  ;;  %s2771_s23 = sshll.u32 %s4069_s10, 4 }
 0x706   : > { %2843 = dma.vmem_to_hbm [thread:$0]  (%p4302_p6), %s2190_s5, 128, %s2192_s17, %s4522_s8  }
 0x707   : > { %s2172_s13 = sshll.u32 %s4448_s19, 4  ;;  %s2147_s16 = scalar_lea.sflag [#allocation5], %s4329_s6  ;;  %s2173_s13 = int_to_ptr.vmem [resolvable:$true] %s2172_s13 }
 0x70b   : > { %s2171_s15 = scalar_lea.hbm %s4706_s7, %s2771_s23  ;;  %s3671_s20 = scalar_lea.hbm %s4706_s7, 32 }
 0x70c   : > { %s2174_s12 = sshll.u32 %s2171_s15, 4  ;;  %s2175_s12 = int_to_ptr.hbm [resolvable:$true] %s2174_s12 }
 0x70d   : > { %s3665_s14 = sshra.s32 %s2175_s12, 4  ;;  %s3666_s14 = int_to_ptr.hbm [resolvable:$true] %s3665_s14 }
 0x70e   : > { %s3667_s18 = scalar_lea.hbm %s3666_s14, 16  ;;  %p3672_p5 = scmp.lt.s32.totalorder %s3666_s14, %s4706_s7 }
 0x70f   : > { %p3668_p1 = scmp.ne.s32.totalorder %s3666_s14, %s3667_s18  ;;  %p3673_p7 = scmp.lt.s32.totalorder %s3671_s20, %s3667_s18 }
 0x711   : > { %p3669_p3 = pnand %p3668_p1, %p4302_p6  ;;  %p3674_p9 = por %p3673_p7, %p3672_p5 }
 0x713   : > { %p3670_p4 = pneg %p3669_p3 }
 0x715   : > { %p3675_p0 = pnand %p3674_p9, %p3670_p4 }
 0x717   : > { %3678 = shalt.err (!%p3675_p0)
}
 0x718   : > { %s3875_s5 = smov 128   ;;  %s4707_s19 = sld [smem:[#allocation77_spill]] }
 0x719   : > { %s3876_s17 = smov 8   ;;  %s4708_s15 = scalar_lea.vmem [#allocation35], %s4329_s6 }
 0x71a   : > { %2842 = dma.vmem_to_hbm [thread:$0]  (%p4302_p6), %s2173_s13, 256, %s2175_s12, %s2147_s16, %s3875_s5, %s3875_s5, %s3876_s17  }
 0x71b   : > { %s2202_s21 = sshll.u32 %s4708_s15, 4  ;;  %s2203_s21 = int_to_ptr.vmem [resolvable:$true] %s2202_s21 }
 0x71e   : > { %s2200_s23 = scalar_lea.hbm %s4707_s19, %s4069_s10  ;;  %s3699_s7 = scalar_lea.hbm %s4707_s19, 2 }
 0x71f   : > { %s2204_s14 = sshll.u32 %s2200_s23, 4  ;;  %s2205_s14 = int_to_ptr.hbm [resolvable:$true] %s2204_s14 }
 0x720   : > { %s3693_s20 = sshra.s32 %s2205_s14, 4  ;;  %s3694_s20 = int_to_ptr.hbm [resolvable:$true] %s3693_s20 }
 0x721   : > { %s3695_s18 = scalar_lea.hbm %s3694_s20, 1  ;;  %p3700_p12 = scmp.lt.s32.totalorder %s3694_s20, %s4707_s19 }
 0x722   : > { %p3696_p11 = scmp.ne.s32.totalorder %s3694_s20, %s3695_s18  ;;  %p3701_p13 = scmp.lt.s32.totalorder %s3699_s7, %s3695_s18 }
 0x724   : > { %p3697_p8 = pnand %p3696_p11, %p4302_p6  ;;  %p3702_p2 = por %p3701_p13, %p3700_p12 }
 0x726   : > { %p3698_p10 = pneg %p3697_p8 }
 0x728   : > { %p3703_p1 = pnand %p3702_p2, %p3698_p10 }
 0x72a   : > { %3706 = shalt.err (!%p3703_p1)
}
 0x72b   : > { %s4709_s13 = sld [smem:[#allocation78_spill]]  ;;  %v2113_v19 = vpop.permute.xlu0 %2112  ;;  %s1297_s16 = scalar_lea.vmem [#allocation36], %s4329_s6 }
 0x72c   : > { %2844 = dma.vmem_to_hbm [thread:$0]  (%p4302_p6), %s2203_s21, 16, %s2205_s14, %s4522_s8   ;;  %v2115_v20 = vperm.slane %v2113_v19, 0 }
 0x72d   : > { %s2215_s5 = sshll.u32 %s1297_s16, 4  ;;  %s2161_s17 = scalar_lea.sflag [#allocation37], %s4329_s6  ;;  %s2216_s5 = int_to_ptr.vmem [resolvable:$true] %s2215_s5 }
 0x731   : > { %s2213_s12 = scalar_lea.hbm %s4709_s13, %s4069_s10  ;;  %s3727_s21 = scalar_lea.hbm %s4709_s13, 2 }
 0x732   : > { %s2217_s7 = sshll.u32 %s2213_s12, 4  ;;  %s2218_s7 = int_to_ptr.hbm [resolvable:$true] %s2217_s7 }
 0x733   : > { %s3721_s23 = sshra.s32 %s2218_s7, 4  ;;  %s3722_s23 = int_to_ptr.hbm [resolvable:$true] %s3721_s23 }
 0x734   : > { %s3723_s15 = scalar_lea.hbm %s3722_s23, 1  ;;  %p3728_p7 = scmp.lt.s32.totalorder %s3722_s23, %s4709_s13 }
 0x735   : > { %p3724_p3 = scmp.ne.s32.totalorder %s3722_s23, %s3723_s15  ;;  %p3729_p9 = scmp.lt.s32.totalorder %s3727_s21, %s3723_s15 }
 0x737   : > { %p3725_p4 = pnand %p3724_p3, %p4302_p6  ;;  %p3730_p0 = por %p3729_p9, %p3728_p7 }
 0x739   : > { %p3726_p5 = pneg %p3725_p4 }
 0x73b   : > { %p3731_p11 = pnand %p3730_p0, %p3726_p5 }
 0x786   : > { %v2142_v21 = vpop.f32.mrf.mxu2 }
 0x787   : > { %v2143_v22 = vadd.f32 %v2142_v21, %v2115_v20 }
 0x789   : > { %2145 = vst.msk [vmem:[%s1297_s16] sm:$0x1] %vm1880_vm4, %v2143_v22 }
 0x78a   : > { %3734 = shalt.err (!%p3731_p11)
}
 0x78b   : > { %2845 = dma.vmem_to_hbm [thread:$0]  (%p4302_p6), %s2216_s5, 16, %s2218_s7, %s2161_s17  }
 0x78c PF: > { %s2229_s10 = sand.u32 1, %s3805_s0   ;;  %p4710_p8 = scmp.ne.s32.totalorder %s4676_s3, 0 }
 0x78d   : > { %p4711_p10 = scmp.ge.s32.totalorder %s3817_s28, 2  ;;  %s2230_s6 = scalar_lea.sflag [#allocation5], %s2229_s10 }
 0x78f   : > { %p2907_p12 = pnand %p4711_p10, %p4710_p8 }
 0x791   : > { %p2908_p13 = pneg %p2907_p12 }
 0x793   : > { %3792 = dma.done.wait (%p2908_p13), %s2230_s6, 256  }
 0x794   : > { %3794 = vsyncadd (%p2908_p13), %s2230_s6, 4294967040  ;;  %s4712_s8 = sadd.s32 4294967294, %s3817_s28  }
 0x795   : > { %s2239_s14 = sand.u32 1, %s4712_s8  }
 0x796   : > { %s2240_s20 = scalar_lea.sflag [#allocation34], %s2239_s14 }
 0x797   : > { %3796 = dma.done.wait (%p2908_p13), %s2240_s20, 144  }
 0x798   : > { %3798 = vsyncadd (%p2908_p13), %s2240_s20, 4294967152  ;;  %s2259_s2 = scalar_lea.sflag [#allocation37], %s2229_s10 }
 0x799   : > { %3800 = dma.done.wait (%p2908_p13), %s2259_s2, 16  }
 0x79a   : > { %3802 = vsyncadd (%p2908_p13), %s2259_s2, 4294967280  ;;  %p96_p6 = scmp.ge.s32.totalorder %s4282_s4, 4   ;;  %s4713_s0 = smov %s3809_s9 }
 0x79b   : > { %s4714_s9 = smov %s3813_s1  ;;  %s4715_s1 = smov %s4294_s11 }
 0x79c   : > { %s4716_s28 = smov %s4282_s4  ;;  %98 = sbr.rel (!%p96_p6) target bundleno = 83 (0x53), region = 335 }
 0x7a1   :  { %2264 = vsyncpa [#allocation4], 1 }
 0x7a2   :  { %2266 = vsyncpa [#allocation4 + $0x1], 1 }
 0x7a3   :  { %2267 = vsyncpa [#allocation7], 1 }
 0x7a4   :  { %2268 = vsyncpa [#allocation10], 1 }
 0x7a5   :  { %2269 = vsyncpa [#allocation13], 1 }
 0x7a6   :  { %2270 = vsyncpa [#allocation16], 1 }
 0x7a7   :  { %2271 = vsyncpa [#allocation19], 1 }
 0x7a8   :  { %2272 = vsyncpa [#allocation22], 1 }
 0x7a9   :  { %2273 = vsyncpa [#allocation25], 1 }
 0x7aa   :  { %2274 = vsyncpa [#allocation28], 1 }
 0x7ab   :  { %2275 = vsyncpa [#allocation31], 1 }
 0x7ac   :  { %2276 = vsyncpa [#allocation5], 1 }
 0x7ad   :  { %2278 = vsyncpa [#allocation5 + $0x1], 1 }
 0x7ae   :  { %2279 = vsyncpa [#allocation34], 1 }
 0x7af   :  { %2281 = vsyncpa [#allocation34 + $0x1], 1 }
 0x7b0   :  { %2282 = vsyncpa [#allocation37], 1 }
 0x7b1   :  { %2284 = vsyncpa [#allocation37 + $0x1], 1 }

</bundles_post_ra>
